<compile_context>
chip_gen: v7x
topology: tpu7x:2x2x1
jax: 0.10.0
libtpu: 0.0.40
codegen_flags: <defaults>
</compile_context>

<pallas_src>
from functools import partial

import jax
import jax.numpy as jnp
from jax.experimental import pallas as pl
from jax.experimental.pallas import tpu as pltpu


def _pruning_kernel(x_ref, w_ref, b_ref, wh_ref, bh_ref, out_ref):
    # x_ref: (tn, Cin) -- points on sublanes, channels on lanes (tiny pad).
    # Conv2d(Cin, 128, 1x1) with eval-mode BatchNorm folded in, then ReLU.
    # TODO(synk): training-mode batch statistics are not reproduced (eval BN).
    h = jnp.dot(x_ref[...], w_ref[...],
                preferred_element_type=jnp.float32)            # (tn, 128)
    h = jnp.maximum(h + b_ref[...], 0.0)                       # lane-dense bias + ReLU

    # TODO(synk): embed_0 / embed_1 (SCTBlock & DATBlock stacks) are not
    # defined in the provided reference source; treated as identity here.

    # linear_0 / linear_1 (Conv2d 128->1, 1x1) fused into one MXU matmul,
    # q@k.T-style contraction so the result (and store) is lane-dense (2, tn).
    heads = jax.lax.dot_general(
        wh_ref[...], h,
        dimension_numbers=(((1,), (1,)), ((), ())),
        preferred_element_type=jnp.float32)                    # (2, tn)
    out_ref[...] = heads + bh_ref[...]                         # (2,1) head biases


def _run_pruning_kernel(x_flat, w_conv, b_conv, w_heads, b_heads):
    """x_flat: (B*N, Cin).  Returns head logits of shape (2, B*N)."""
    BN, Cin = x_flat.shape
    Cout = w_conv.shape[1]

    # One tile for small problems; tile the lane axis for realistic point
    # clouds so the (tn, 128) f32 intermediate doesn't spill.
    if BN <= 4096 or BN % 128 != 0:
        tn = BN
    else:
        tn = 2048
        while BN % tn:
            tn //= 2
    grid_n = BN // tn

    const = lambda shape: pl.BlockSpec(shape, lambda i: (0,) * len(shape))

    out = pl.pallas_call(
        _pruning_kernel,
        out_shape=jax.ShapeDtypeStruct((2, BN), jnp.float32),
        grid=(grid_n,),
        in_specs=[
            pl.BlockSpec((tn, Cin), lambda i: (i, 0)),   # x: points-on-lanes tiles
            const((Cin, Cout)),                          # folded conv weight (K, N)
            const((1, Cout)),                            # folded conv bias (lane-dense)
            const((2, Cout)),                            # stacked head weights
            const((2, 1)),                               # head biases
        ],
        out_specs=pl.BlockSpec((2, tn), lambda i: (0, i)),
        compiler_params=pltpu.CompilerParams(
            # Single latency-bound step: no point sharding across v7x cores.
            dimension_semantics=("parallel",) if grid_n > 1 else ("arbitrary",)),
    )(x_flat, w_conv, b_conv, w_heads, b_heads)
    return out


@partial(jax.jit, static_argnames=("sampling_rate",))
def pruning_block_forward(x, y, params, sampling_rate=0.5):
    """x: (B, 1, N, 4) float32, y: (B, N) float32.
    Returns (x_ds, y_ds, [w0, w1], [w0_ds, w1_ds]) like the predict=False path.
    """
    B, _, N, _ = x.shape

    # --- one-time parameter folding (BN eval-mode affine into conv) ---------
    scale = params["bn_g"] * jax.lax.rsqrt(params["bn_var"] + 1e-5)       # (1, Cout)
    w_conv = params["conv_w"] * scale                                     # (Cin, Cout)
    b_conv = (params["conv_b"] - params["bn_mean"]) * scale + params["bn_b"]  # (1, Cout)
    w_heads = jnp.concatenate([params["lin0_w"], params["lin1_w"]], axis=0)   # (2, Cout)
    b_heads = params["lin_b"].reshape(2, 1)                               # (2, 1)

    # Batch folded into the lane axis; contiguous reshape, no transpose launch.
    x_flat = x.reshape(B * N, 4)                                          # (B*N, Cin)

    heads = _run_pruning_kernel(x_flat, w_conv, b_conv, w_heads, b_heads)  # (2, B*N)
    w0 = heads[0].reshape(B, N)
    w1 = heads[1].reshape(B, N)

    # --- down-sampling glue (plain JAX, same jit) ----------------------------
    k = int(N * sampling_rate)
    # TODO(synk): torch.sort(descending=True)[:, :k] == top_k as a set, but
    # tie/index ordering may differ from PyTorch.
    w1_ds, indices = jax.lax.top_k(w1, k)                                 # (B, k)

    # Fuse the y and w0 gathers into a single take_along_axis.
    yw0 = jnp.stack([y, w0], axis=1)                                      # (B, 2, N)
    g = jnp.take_along_axis(yw0, indices[:, None, :], axis=-1)            # (B, 2, k)
    y_ds, w0_ds = g[:, 0], g[:, 1]

    idx4 = jnp.broadcast_to(indices[:, None, :, None], (B, 1, k, 4))
    x_ds = jnp.take_along_axis(x[:, :, :, :4], idx4, axis=2)              # (B, 1, k, 4)

    return x_ds, y_ds, [w0, w1], [w0_ds, w1_ds]


def _reference_heads(x_bnc, p):
    """Pure-JAX reference for the kernel part (unfolded BN; sanity check)."""
    h = x_bnc @ p["conv_w"] + p["conv_b"]
    h = (h - p["bn_mean"]) * (p["bn_g"] * jax.lax.rsqrt(p["bn_var"] + 1e-5)) + p["bn_b"]
    h = jnp.maximum(h, 0.0)
    w0 = jnp.sum(h * p["lin0_w"], axis=-1) + p["lin_b"][0]
    w1 = jnp.sum(h * p["lin1_w"], axis=-1) + p["lin_b"][1]
    return w0, w1


if __name__ == "__main__":
    key = jax.random.PRNGKey(0)
    B, N = 2, 256
    C_in, C_out = 4, 128        # initial=True -> in_channel=4; out_channel=128
    sr = 0.5

    ks = jax.random.split(key, 8)
    x = jax.random.normal(ks[0], (B, 1, N, C_in), jnp.float32)
    y = jax.random.normal(ks[1], (B, N), jnp.float32)

    params = {
        "conv_w": 0.1 * jax.random.normal(ks[2], (C_in, C_out), jnp.float32),
        "conv_b": 0.1 * jax.random.normal(ks[3], (1, C_out), jnp.float32),
        "bn_g": 1.0 + 0.05 * jax.random.normal(ks[7], (1, C_out), jnp.float32),
        "bn_b": 0.05 * jnp.ones((1, C_out), jnp.float32),
        "bn_mean": 0.01 * jnp.ones((1, C_out), jnp.float32),
        "bn_var": jnp.ones((1, C_out), jnp.float32),
        "lin0_w": 0.1 * jax.random.normal(ks[4], (1, C_out), jnp.float32),
        "lin1_w": 0.1 * jax.random.normal(ks[5], (1, C_out), jnp.float32),
        "lin_b": 0.1 * jax.random.normal(ks[6], (2,), jnp.float32),
    }

    x_ds, y_ds, (w0, w1), (w0_ds, w1_ds) = jax.block_until_ready(
        pruning_block_forward(x, y, params, sampling_rate=sr))

    # Sanity-check the kernel part against a pure-JAX reference (f32, tight tol).
    w0_ref, w1_ref = _reference_heads(x[:, 0], params)
    assert jnp.allclose(w0, w0_ref, atol=1e-4, rtol=1e-4)
    assert jnp.allclose(w1, w1_ref, atol=1e-4, rtol=1e-4)
    assert x_ds.shape == (B, 1, int(N * sr), 4)
    assert y_ds.shape == (B, int(N * sr))
    assert w0_ds.shape == (B, int(N * sr)) and w1_ds.shape == (B, int(N * sr))

    print("KERNEL_OK")
</pallas_src>

<mosaic_0001>
module attributes {stable_mosaic.version = 11 : i64} {
  func.func @_pruning_kernel(%arg0: i32, %arg1: memref<512x4xf32, #tpu.memory_space<vmem>>, %arg2: memref<4x128xf32, #tpu.memory_space<vmem>>, %arg3: memref<1x128xf32, #tpu.memory_space<vmem>>, %arg4: memref<2x128xf32, #tpu.memory_space<vmem>>, %arg5: memref<2x1xf32, #tpu.memory_space<vmem>>, %arg6: memref<2x512xf32, #tpu.memory_space<vmem>>) attributes {dimension_semantics = [#tpu.dimension_semantics<arbitrary>], iteration_bounds = array<i64: 1>, scalar_prefetch = 0 : i64, scratch_operands = 0 : i64, tpu.core_type = #tpu.core_type<tc>, window_params = [{transform_indices = @transform_0, window_bounds = array<i64: 512, 4>}, {pipeline_mode = #tpu.pipeline_mode<synchronous>, transform_indices = @transform_1, window_bounds = array<i64: 4, 128>}, {pipeline_mode = #tpu.pipeline_mode<synchronous>, transform_indices = @transform_2, window_bounds = array<i64: 1, 128>}, {pipeline_mode = #tpu.pipeline_mode<synchronous>, transform_indices = @transform_3, window_bounds = array<i64: 2, 128>}, {pipeline_mode = #tpu.pipeline_mode<synchronous>, transform_indices = @transform_4, window_bounds = array<i64: 2, 1>}, {transform_indices = @transform_5, window_bounds = array<i64: 2, 512>}]} {
    %c0 = arith.constant 0 : index
    %c0_0 = arith.constant 0 : index
    %0 = vector.load %arg1[%c0, %c0_0] : memref<512x4xf32, #tpu.memory_space<vmem>>, vector<512x4xf32>
    %c0_1 = arith.constant 0 : index
    %c0_2 = arith.constant 0 : index
    %1 = vector.load %arg2[%c0_1, %c0_2] : memref<4x128xf32, #tpu.memory_space<vmem>>, vector<4x128xf32>
    %cst = arith.constant dense<0.000000e+00> : vector<512x128xf32>
    %2 = tpu.matmul %0, %1, %cst {dimension_numbers = #tpu.dot_dimension_numbers<[1], [0], [0], [1], [0, 0, 1, 1], [], []>} : vector<512x4xf32>, vector<4x128xf32>, vector<512x128xf32> -> vector<512x128xf32>
    %c0_3 = arith.constant 0 : index
    %c0_4 = arith.constant 0 : index
    %3 = vector.load %arg3[%c0_3, %c0_4] : memref<1x128xf32, #tpu.memory_space<vmem>>, vector<1x128xf32>
    %4 = vector.broadcast %3 : vector<1x128xf32> to vector<512x128xf32>
    %5 = arith.addf %2, %4 : vector<512x128xf32>
    %cst_5 = arith.constant 0.000000e+00 : f32
    %6 = vector.broadcast %cst_5 : f32 to vector<512x128xf32>
    %7 = arith.maximumf %5, %6 : vector<512x128xf32>
    %c0_6 = arith.constant 0 : index
    %c0_7 = arith.constant 0 : index
    %8 = vector.load %arg4[%c0_6, %c0_7] : memref<2x128xf32, #tpu.memory_space<vmem>>, vector<2x128xf32>
    %cst_8 = arith.constant dense<0.000000e+00> : vector<2x512xf32>
    %9 = tpu.matmul %8, %7, %cst_8 {dimension_numbers = #tpu.dot_dimension_numbers<[1], [1], [0], [0], [0, 0, 1, 0], [], []>} : vector<2x128xf32>, vector<512x128xf32>, vector<2x512xf32> -> vector<2x512xf32>
    %c0_9 = arith.constant 0 : index
    %c0_10 = arith.constant 0 : index
    %10 = vector.load %arg5[%c0_9, %c0_10] : memref<2x1xf32, #tpu.memory_space<vmem>>, vector<2x1xf32>
    %11 = vector.broadcast %10 : vector<2x1xf32> to vector<2x512xf32>
    %12 = arith.addf %9, %11 : vector<2x512xf32>
    %c0_11 = arith.constant 0 : index
    %c0_12 = arith.constant 0 : index
    %13 = vector.load %arg6[%c0_11, %c0_12] : memref<2x512xf32, #tpu.memory_space<vmem>>, vector<2x512xf32>
    tpu.vector_store %arg6[%c0_11, %c0_12], %12 {strides = array<i32>} : memref<2x512xf32, #tpu.memory_space<vmem>>, vector<2x512xf32>,
    return
  }
  func.func @transform_0(%arg0: i32) -> (i32, i32) {
    %c0_i32 = arith.constant 0 : i32
    %c0_i32_0 = arith.constant 0 : i32
    return %arg0, %c0_i32 : i32, i32
  }
  func.func @transform_1(%arg0: i32) -> (i32, i32) {
    %c0_i32 = arith.constant 0 : i32
    %c0_i32_0 = arith.constant 0 : i32
    %c0_i32_1 = arith.constant 0 : i32
    return %c0_i32, %c0_i32_0 : i32, i32
  }
  func.func @transform_2(%arg0: i32) -> (i32, i32) {
    %c0_i32 = arith.constant 0 : i32
    %c0_i32_0 = arith.constant 0 : i32
    %c0_i32_1 = arith.constant 0 : i32
    return %c0_i32, %c0_i32_0 : i32, i32
  }
  func.func @transform_3(%arg0: i32) -> (i32, i32) {
    %c0_i32 = arith.constant 0 : i32
    %c0_i32_0 = arith.constant 0 : i32
    %c0_i32_1 = arith.constant 0 : i32
    return %c0_i32, %c0_i32_0 : i32, i32
  }
  func.func @transform_4(%arg0: i32) -> (i32, i32) {
    %c0_i32 = arith.constant 0 : i32
    %c0_i32_0 = arith.constant 0 : i32
    %c0_i32_1 = arith.constant 0 : i32
    return %c0_i32, %c0_i32_0 : i32, i32
  }
  func.func @transform_5(%arg0: i32) -> (i32, i32) {
    %c0_i32 = arith.constant 0 : i32
    %c0_i32_0 = arith.constant 0 : i32
    return %c0_i32, %arg0 : i32, i32
  }
}

</mosaic_0001>

<bundles_post_ra>
// kernel: squeeze.6
= control target key start
LH: loop header
LB: loop body
LE: loop exit
PB: predicated region body
PF: predicated region fallthrough
CT: control target
= control target key end

     0   :  { %s41_s0 = inlined_call_operand.vmem [shape: f32[512], index: 0, kind: input, shape index: {}]   ;;  %s42_s1 = inlined_call_operand.vmem [shape: f32[2,256], index: 1, kind: output, shape index: {}]  }
   0x1   :  { %v4_v0 = vld [vmem:[%s41_s0] sm:$0xf] }
   0x2   :  { %5 = vst [vmem:[#allocation1] sm:$0xf] %v4_v0 }
   0x9   :  { %v6_v1 = vld [vmem:[#allocation1] sm:$0xf]  }
   0xa   :  { %7 = vst [vmem:[#allocation0] ss:$8 sm:$0x3] %v6_v1   ;;  %9 = vst [vmem:[#allocation0 - $0xf] ss:$8 sm:$0xc] %v6_v1  }
  0x11   :  { %v13_v2 = vld [vmem:[#allocation0] sm:$0x3]  ;;  %v17_v3 = vld [vmem:[#allocation0 + $0x8] sm:$0x3] }
  0x12   :  { %15 = vst [vmem:[%s42_s1] sm:$0x3] %v13_v2  ;;  %21 = vst [vmem:[%s42_s1 + $0x2] sm:$0x3] %v17_v3 }

// kernel: squeeze.5
= control target key start
LH: loop header
LB: loop body
LE: loop exit
PB: predicated region body
PF: predicated region fallthrough
CT: control target
= control target key end

     0   :  { %2 = vsyncpa [#allocation1], 0  ;;  %s83_s0 = inlined_call_operand.vmem [shape: f32[512], index: 0, kind: input, shape index: {}]   ;;  %s84_s1 = inlined_call_operand.hbm [shape: f32[2,256], index: 1, kind: output, shape index: {}]  }
   0x1   :  { %v5_v0 = vld [vmem:[%s83_s0] sm:$0xf]  ;;  %s57_s0 = smov [#allocation0]  }
   0x2   :  { %6 = vst [vmem:[#allocation3] sm:$0xf] %v5_v0  ;;  %s26_s8 = sshll.u32 %s57_s0, 4  ;;  %s27_s8 = int_to_ptr.vmem [resolvable:$true] %s26_s8 }
   0x3   :  { %s33_s9 = scalar_lea.vmem %s27_s8, 64  ;;  %p38_p1 = scmp.lt.s32.totalorder %s27_s8, %s27_s8 }
   0x4   :  { %p34_p0 = scmp.ne.s32.totalorder %s27_s8, %s33_s9  ;;  %p39_p2 = scmp.lt.s32.totalorder %s33_s9, %s33_s9 }
   0x6   :  { %p40_p3 = por %p39_p2, %p38_p1 }
   0x8   :  { %p41_p4 = pnand %p40_p3, %p34_p0 }
   0x9   :  { %v7_v1 = vld [vmem:[#allocation3] sm:$0xf]  }
   0xa   :  { %8 = vst [vmem:[#allocation2] ss:$8 sm:$0x3] %v7_v1   ;;  %10 = vst [vmem:[#allocation2 - $0xf] ss:$8 sm:$0xc] %v7_v1  }
  0x11   :  { %v14_v2 = vld [vmem:[#allocation2] sm:$0x3]  ;;  %v18_v3 = vld [vmem:[#allocation2 + $0x8] sm:$0x3] }
  0x12   :  { %16 = vst [vmem:[#allocation0] sm:$0x3] %v14_v2  ;;  %21 = vst [vmem:[#allocation0 + $0x2] sm:$0x3] %v18_v3 }
  0x13   :  { %44 = shalt.err (!%p41_p4)
}
  0x14   :  { %s45_s12 = scalar_lea.hbm %s84_s1, 64 }
  0x15   :  { %p46_p5 = scmp.ne.s32.totalorder %s84_s1, %s45_s12  ;;  %p49_p6 = scmp.lt.u32.totalorder %s45_s12, %s84_s1 }
  0x17   :  { %p51_p7 = pnand %p49_p6, %p46_p5 }
  0x19   :  { %54 = shalt.err (!%p51_p7)
}
  0x1a   :  { %29 = dma.vmem_to_hbm [thread:$0]  %s27_s8, 64, %s84_s1, [#allocation1]  }
  0x1b   :  { %55 = dma.done.wait [#allocation1], 64  }
  0x1c   :  { %56 = vsyncadd [#allocation1], 4294967232 }
  0x1d   :  { %31 = vsyncpa [#allocation1], 1 }

// kernel: pruning_block_forward.1
= control target key start
LH: loop header
LB: loop body
LE: loop exit
PB: predicated region body
PF: predicated region fallthrough
CT: control target
= control target key end

     0   :  { %vm285_vm0 = vcmask 1043456   ;;  %vm92_vm1 = vcmask 31744   ;;  %s1701_s1 = inlined_call_operand.vmem [shape: f32[4,128], index: 1, kind: input, shape index: {}]   ;;  %s1702_s0 = inlined_call_operand.vmem [shape: f32[512,4], index: 0, kind: input, shape index: {}]   ;;  %s1703_s3 = inlined_call_operand.vmem [shape: f32[2,128], index: 3, kind: input, shape index: {}]   ;;  %s1704_s2 = inlined_call_operand.vmem [shape: f32[1,128], index: 2, kind: input, shape index: {}]   ;;  %s1705_s4 = inlined_call_operand.vmem [shape: f32[2,1], index: 4, kind: input, shape index: {}]   ;;  %s1706_s5 = inlined_call_operand.vmem [shape: f32[2,512], index: 5, kind: output, shape index: {}]  }
   0x1   :  { %v84_v0 = vld [vmem:[%s1701_s1] sm:$0xf]  ;;  %v21_v2 = vld [vmem:[%s1702_s0 + $0x8] sm:$0xff]  ;;  %v22_v3 = vld [vmem:[%s1702_s0 + $0x10] sm:$0xff] }
   0x2   :  { %v20_v1 = vld [vmem:[%s1702_s0] sm:$0xff]  ;;  %1113 = vmatprep.subr.msk.mxu0 %vm285_vm0, %v84_v0  ;;  %v23_v4 = vld [vmem:[%s1702_s0 + $0x18] sm:$0xff]  ;;  %v25_v6 = vld [vmem:[%s1702_s0 + $0x28] sm:$0xff] }
   0x3   :  { %1115 = vmatprep.mubr.msk.f32.mxu0 %vm92_vm1, %v20_v1  ;;  %1114 = vmatpush3.msk.msra.mxu0 %vm285_vm0, %v84_v0  ;;  %v24_v5 = vld [vmem:[%s1702_s0 + $0x20] sm:$0xff]  ;;  %v26_v7 = vld [vmem:[%s1702_s0 + $0x30] sm:$0xff]  ;;  %v27_v8 = vld [vmem:[%s1702_s0 + $0x38] sm:$0xff] }
   0x4   :  { %1116 = vmatmul.mubr.msk.f32.vlgmr.msra.gmra.mrb[0].mxu0 %vm92_vm1, %v21_v2  ;;  %v28_v9 = vld [vmem:[%s1702_s0 + $0x40] sm:$0xff]  ;;  %v29_v10 = vld [vmem:[%s1702_s0 + $0x48] sm:$0xff]  ;;  %v30_v11 = vld [vmem:[%s1702_s0 + $0x50] sm:$0xff] }
   0x5   :  { %1118 = vmatprep.mubr.msk.f32.mxu0 %vm92_vm1, %v22_v3  ;;  %v31_v12 = vld [vmem:[%s1702_s0 + $0x58] sm:$0xff]  ;;  %v32_v13 = vld [vmem:[%s1702_s0 + $0x60] sm:$0xff]  ;;  %v33_v14 = vld [vmem:[%s1702_s0 + $0x68] sm:$0xff] }
   0x6   :  { %v34_v15 = vld [vmem:[%s1702_s0 + $0x70] sm:$0xff]  ;;  %v35_v16 = vld [vmem:[%s1702_s0 + $0x78] sm:$0xff]  ;;  %v36_v17 = vld [vmem:[%s1702_s0 + $0x80] sm:$0xff] }
   0x7   :  { %v37_v18 = vld [vmem:[%s1702_s0 + $0x88] sm:$0xff]  ;;  %v38_v19 = vld [vmem:[%s1702_s0 + $0x90] sm:$0xff]  ;;  %v39_v20 = vld [vmem:[%s1702_s0 + $0x98] sm:$0xff] }
   0x8   :  { %1119 = vmatmul.mubr.msk.f32.gmra.mrb[2].mxu0 %vm92_vm1, %v23_v4  ;;  %v40_v21 = vld [vmem:[%s1702_s0 + $0xa0] sm:$0xff]  ;;  %v41_v22 = vld [vmem:[%s1702_s0 + $0xa8] sm:$0xff]  ;;  %v42_v23 = vld [vmem:[%s1702_s0 + $0xb0] sm:$0xff] }
   0x9   :  { %1121 = vmatprep.mubr.msk.f32.mxu0 %vm92_vm1, %v24_v5  ;;  %v43_v24 = vld [vmem:[%s1702_s0 + $0xb8] sm:$0xff]  ;;  %v44_v25 = vld [vmem:[%s1702_s0 + $0xc0] sm:$0xff]  ;;  %v45_v26 = vld [vmem:[%s1702_s0 + $0xc8] sm:$0xff] }
   0xa   :  { %v46_v27 = vld [vmem:[%s1702_s0 + $0xd0] sm:$0xff]  ;;  %v47_v28 = vld [vmem:[%s1702_s0 + $0xd8] sm:$0xff]  ;;  %v48_v29 = vld [vmem:[%s1702_s0 + $0xe0] sm:$0xff] }
   0xb   :  { %v49_v30 = vld [vmem:[%s1702_s0 + $0xe8] sm:$0xff]  ;;  %v50_v31 = vld [vmem:[%s1702_s0 + $0xf0] sm:$0xff]  ;;  %v51_v32 = vld [vmem:[%s1702_s0 + $0xf8] sm:$0xff] }
   0xc   :  { %1122 = vmatmul.mubr.msk.f32.gmra.mrb[4].mxu0 %vm92_vm1, %v25_v6  ;;  %v52_v33 = vld [vmem:[%s1702_s0 + $0x100] sm:$0xff]  ;;  %v53_v34 = vld [vmem:[%s1702_s0 + $0x108] sm:$0xff]  ;;  %v54_v35 = vld [vmem:[%s1702_s0 + $0x110] sm:$0xff] }
   0xd   :  { %1124 = vmatprep.mubr.msk.f32.mxu0 %vm92_vm1, %v26_v7  ;;  %v55_v36 = vld [vmem:[%s1702_s0 + $0x118] sm:$0xff]  ;;  %v56_v37 = vld [vmem:[%s1702_s0 + $0x120] sm:$0xff]  ;;  %v57_v38 = vld [vmem:[%s1702_s0 + $0x128] sm:$0xff] }
   0xe   :  { %v58_v39 = vld [vmem:[%s1702_s0 + $0x130] sm:$0xff]  ;;  %v59_v40 = vld [vmem:[%s1702_s0 + $0x138] sm:$0xff]  ;;  %v60_v41 = vld [vmem:[%s1702_s0 + $0x140] sm:$0xff] }
   0xf   :  { %v61_v42 = vld [vmem:[%s1702_s0 + $0x148] sm:$0xff]  ;;  %v62_v43 = vld [vmem:[%s1702_s0 + $0x150] sm:$0xff]  ;;  %v63_v44 = vld [vmem:[%s1702_s0 + $0x158] sm:$0xff] }
  0x10   :  { %1125 = vmatmul.mubr.msk.f32.gmra.mrb[6].mxu0 %vm92_vm1, %v27_v8  ;;  %v64_v45 = vld [vmem:[%s1702_s0 + $0x160] sm:$0xff]  ;;  %v65_v46 = vld [vmem:[%s1702_s0 + $0x168] sm:$0xff]  ;;  %v66_v47 = vld [vmem:[%s1702_s0 + $0x170] sm:$0xff] }
  0x11   :  { %1127 = vmatprep.mubr.msk.f32.mxu0 %vm92_vm1, %v28_v9  ;;  %v67_v48 = vld [vmem:[%s1702_s0 + $0x178] sm:$0xff]  ;;  %v68_v49 = vld [vmem:[%s1702_s0 + $0x180] sm:$0xff]  ;;  %v69_v50 = vld [vmem:[%s1702_s0 + $0x188] sm:$0xff] }
  0x12   :  { %v70_v51 = vld [vmem:[%s1702_s0 + $0x190] sm:$0xff]  ;;  %v71_v52 = vld [vmem:[%s1702_s0 + $0x198] sm:$0xff]  ;;  %v72_v53 = vld [vmem:[%s1702_s0 + $0x1a0] sm:$0xff] }
  0x13   :  { %v73_v54 = vld [vmem:[%s1702_s0 + $0x1a8] sm:$0xff]  ;;  %v74_v55 = vld [vmem:[%s1702_s0 + $0x1b0] sm:$0xff]  ;;  %v75_v56 = vld [vmem:[%s1702_s0 + $0x1b8] sm:$0xff] }
  0x14   :  { %1128 = vmatmul.mubr.msk.f32.gmra.mrb[8].mxu0 %vm92_vm1, %v29_v10  ;;  %v76_v57 = vld [vmem:[%s1702_s0 + $0x1c0] sm:$0xff]  ;;  %v77_v58 = vld [vmem:[%s1702_s0 + $0x1c8] sm:$0xff]  ;;  %v78_v59 = vld [vmem:[%s1702_s0 + $0x1d0] sm:$0xff] }
  0x15   :  { %1130 = vmatprep.mubr.msk.f32.mxu0 %vm92_vm1, %v30_v11  ;;  %v79_v60 = vld [vmem:[%s1702_s0 + $0x1d8] sm:$0xff]  ;;  %v80_v61 = vld [vmem:[%s1702_s0 + $0x1e0] sm:$0xff]  ;;  %v81_v62 = vld [vmem:[%s1702_s0 + $0x1e8] sm:$0xff] }
  0x16   :  { %v82_v63 = vld [vmem:[%s1702_s0 + $0x1f0] sm:$0xff]  ;;  %v83_v0 = vld [vmem:[%s1702_s0 + $0x1f8] sm:$0xff]  ;;  %v1572_v1 = vld [vmem:[%s1703_s3] sm:$0x3] }
  0x17   :  { %1077 = vmatprep.mubr.f32.mxu1 %v1572_v1  ;;  %v1578_v2 = vld [vmem:[%s1704_s2] ss:$0 sm:$0xff] }
  0x18   :  { %1131 = vmatmul.mubr.msk.f32.gmra.mrb[10].mxu0 %vm92_vm1, %v31_v12 }
  0x19   :  { %1133 = vmatprep.mubr.msk.f32.mxu0 %vm92_vm1, %v32_v13 }
  0x1c   :  { %1134 = vmatmul.mubr.msk.f32.gmra.mrb[12].mxu0 %vm92_vm1, %v33_v14 }
  0x1d   :  { %1136 = vmatprep.mubr.msk.f32.mxu0 %vm92_vm1, %v34_v15 }
  0x20   :  { %1137 = vmatmul.mubr.msk.f32.gmra.mrb[14].mxu0 %vm92_vm1, %v35_v16 }
  0x21   :  { %1139 = vmatprep.mubr.msk.f32.mxu0 %vm92_vm1, %v36_v17 }
  0x24   :  { %1140 = vmatmul.mubr.msk.f32.gmra.mrb[16].mxu0 %vm92_vm1, %v37_v18 }
  0x25   :  { %1142 = vmatprep.mubr.msk.f32.mxu0 %vm92_vm1, %v38_v19 }
  0x28   :  { %1143 = vmatmul.mubr.msk.f32.gmra.mrb[18].mxu0 %vm92_vm1, %v39_v20 }
  0x29   :  { %1145 = vmatprep.mubr.msk.f32.mxu0 %vm92_vm1, %v40_v21 }
  0x2c   :  { %1146 = vmatmul.mubr.msk.f32.gmra.mrb[20].mxu0 %vm92_vm1, %v41_v22 }
  0x2d   :  { %1148 = vmatprep.mubr.msk.f32.mxu0 %vm92_vm1, %v42_v23 }
  0x30   :  { %1149 = vmatmul.mubr.msk.f32.gmra.mrb[22].mxu0 %vm92_vm1, %v43_v24 }
  0x31   :  { %1151 = vmatprep.mubr.msk.f32.mxu0 %vm92_vm1, %v44_v25 }
  0x34   :  { %1152 = vmatmul.mubr.msk.f32.gmra.mrb[24].mxu0 %vm92_vm1, %v45_v26 }
  0x35   :  { %1154 = vmatprep.mubr.msk.f32.mxu0 %vm92_vm1, %v46_v27 }
  0x38   :  { %1155 = vmatmul.mubr.msk.f32.gmra.mrb[26].mxu0 %vm92_vm1, %v47_v28 }
  0x39   :  { %1157 = vmatprep.mubr.msk.f32.mxu0 %vm92_vm1, %v48_v29 }
  0x3c   :  { %1158 = vmatmul.mubr.msk.f32.gmra.mrb[28].mxu0 %vm92_vm1, %v49_v30 }
  0x3d   :  { %1160 = vmatprep.mubr.msk.f32.mxu0 %vm92_vm1, %v50_v31 }
  0x40   :  { %1161 = vmatmul.mubr.msk.f32.gmra.mrb[30].mxu0 %vm92_vm1, %v51_v32 }
  0x41   :  { %1163 = vmatprep.mubr.msk.f32.mxu0 %vm92_vm1, %v52_v33 }
  0x44   :  { %1164 = vmatmul.mubr.msk.f32.gmra.mrb[32].mxu0 %vm92_vm1, %v53_v34 }
  0x45   :  { %1166 = vmatprep.mubr.msk.f32.mxu0 %vm92_vm1, %v54_v35 }
  0x48   :  { %1167 = vmatmul.mubr.msk.f32.gmra.mrb[34].mxu0 %vm92_vm1, %v55_v36 }
  0x49   :  { %1169 = vmatprep.mubr.msk.f32.mxu0 %vm92_vm1, %v56_v37 }
  0x4c   :  { %1170 = vmatmul.mubr.msk.f32.gmra.mrb[36].mxu0 %vm92_vm1, %v57_v38 }
  0x4d   :  { %1172 = vmatprep.mubr.msk.f32.mxu0 %vm92_vm1, %v58_v39 }
  0x50   :  { %1173 = vmatmul.mubr.msk.f32.gmra.mrb[38].mxu0 %vm92_vm1, %v59_v40 }
  0x51   :  { %1175 = vmatprep.mubr.msk.f32.mxu0 %vm92_vm1, %v60_v41 }
  0x54   :  { %1176 = vmatmul.mubr.msk.f32.gmra.mrb[40].mxu0 %vm92_vm1, %v61_v42 }
  0x55   :  { %1178 = vmatprep.mubr.msk.f32.mxu0 %vm92_vm1, %v62_v43 }
  0x58   :  { %1179 = vmatmul.mubr.msk.f32.gmra.mrb[42].mxu0 %vm92_vm1, %v63_v44 }
  0x59   :  { %1181 = vmatprep.mubr.msk.f32.mxu0 %vm92_vm1, %v64_v45 }
  0x5c   :  { %1182 = vmatmul.mubr.msk.f32.gmra.mrb[44].mxu0 %vm92_vm1, %v65_v46 }
  0x5d   :  { %1184 = vmatprep.mubr.msk.f32.mxu0 %vm92_vm1, %v66_v47 }
  0x60   :  { %1185 = vmatmul.mubr.msk.f32.gmra.mrb[46].mxu0 %vm92_vm1, %v67_v48 }
  0x61   :  { %1187 = vmatprep.mubr.msk.f32.mxu0 %vm92_vm1, %v68_v49 }
  0x64   :  { %1188 = vmatmul.mubr.msk.f32.gmra.mrb[48].mxu0 %vm92_vm1, %v69_v50 }
  0x65   :  { %1190 = vmatprep.mubr.msk.f32.mxu0 %vm92_vm1, %v70_v51 }
  0x68   :  { %1191 = vmatmul.mubr.msk.f32.gmra.mrb[50].mxu0 %vm92_vm1, %v71_v52 }
  0x69   :  { %1193 = vmatprep.mubr.msk.f32.mxu0 %vm92_vm1, %v72_v53 }
  0x6c   :  { %1194 = vmatmul.mubr.msk.f32.gmra.mrb[52].mxu0 %vm92_vm1, %v73_v54 }
  0x6d   :  { %1196 = vmatprep.mubr.msk.f32.mxu0 %vm92_vm1, %v74_v55 }
  0x70   :  { %1197 = vmatmul.mubr.msk.f32.gmra.mrb[54].mxu0 %vm92_vm1, %v75_v56 }
  0x71   :  { %1199 = vmatprep.mubr.msk.f32.mxu0 %vm92_vm1, %v76_v57 }
  0x74   :  { %1200 = vmatmul.mubr.msk.f32.gmra.mrb[56].mxu0 %vm92_vm1, %v77_v58 }
  0x75   :  { %1202 = vmatprep.mubr.msk.f32.mxu0 %vm92_vm1, %v78_v59 }
  0x78   :  { %1203 = vmatmul.mubr.msk.f32.gmra.mrb[58].mxu0 %vm92_vm1, %v79_v60 }
  0x79   :  { %1205 = vmatprep.mubr.msk.f32.mxu0 %vm92_vm1, %v80_v61 }
  0x7c   :  { %1206 = vmatmul.mubr.msk.f32.gmra.mrb[60].mxu0 %vm92_vm1, %v81_v62 }
  0x7d   :  { %1208 = vmatprep.mubr.msk.f32.mxu0 %vm92_vm1, %v82_v63 }
  0x80   :  { %1209 = vmatmul.mubr.msk.f32.gmra.mrb[62].mxu0 %vm92_vm1, %v83_v0 }
  0xd7   :  { %v1117_v3 = vpop.f32.mrb[0].mxu0 }
  0xd8   :  { %v361_v4 = vadd.f32 %v1117_v3, %v1578_v2  ;;  %v355_v5 = vpop.f32.mrb[1].mxu0 }
  0xd9   :  { %v356_v6 = vadd.f32 %v1578_v2, %v355_v5 }
  0xda   :  { %v675_v7 = vmax.f32 %v361_v4, 0.0 }
  0xdb   :  { %v674_v8 = vmax.f32 %v356_v6, 0.0  ;;  %v1120_v9 = vpop.f32.mrb[2].mxu0 }
  0xdc   :  { %v371_v10 = vadd.f32 %v1120_v9, %v1578_v2  ;;  %v365_v11 = vpop.f32.mrb[3].mxu0 }
  0xdd   :  { %v366_v12 = vadd.f32 %v1578_v2, %v365_v11  ;;  %v1584_v13 = vpack.c.bf16 %v675_v7, %v674_v8 }
  0xde   :  { %v677_v14 = vmax.f32 %v371_v10, 0.0 }
  0xdf   :  { %v676_v15 = vmax.f32 %v366_v12, 0.0  ;;  %v1123_v16 = vpop.f32.mrb[4].mxu0 }
  0xe0   :  { %v381_v17 = vadd.f32 %v1123_v16, %v1578_v2  ;;  %v375_v18 = vpop.f32.mrb[5].mxu0 }
  0xe1   :  { %v1587_v19 = vpack.c.bf16 %v677_v14, %v676_v15  ;;  %v376_v20 = vadd.f32 %v1578_v2, %v375_v18  ;;  %v1278_v14 = vmov 0   ;;  %v739_v15 = vld [vmem:[%s1705_s4] sm:$0x3] }
  0xe2   :  { %v679_v21 = vmax.f32 %v381_v17, 0.0  ;;  %1277 = vset.pattern.permute.xlu0 %v1278_v14 }
  0xe3   :  { %v678_v22 = vmax.f32 %v376_v20, 0.0  ;;  %v1126_v23 = vpop.f32.mrb[6].mxu0  ;;  %742 = vperm.xlu0 %1277, %v739_v15  }
  0xe4   :  { %v391_v24 = vadd.f32 %v1126_v23, %v1578_v2  ;;  %v385_v25 = vpop.f32.mrb[7].mxu0 }
  0xe5   :  { %v1591_v26 = vpack.c.bf16 %v679_v21, %v678_v22  ;;  %v386_v27 = vadd.f32 %v1578_v2, %v385_v25 }
  0xe6   :  { %v681_v28 = vmax.f32 %v391_v24, 0.0 }
  0xe7   :  { %v680_v29 = vmax.f32 %v386_v27, 0.0  ;;  %v1129_v30 = vpop.f32.mrb[8].mxu0 }
  0xe8   :  { %v401_v31 = vadd.f32 %v1129_v30, %v1578_v2  ;;  %v395_v32 = vpop.f32.mrb[9].mxu0 }
  0xe9   :  { %v1595_v33 = vpack.c.bf16 %v681_v28, %v680_v29  ;;  %v396_v34 = vadd.f32 %v1578_v2, %v395_v32 }
  0xea   :  { %v683_v35 = vmax.f32 %v401_v31, 0.0 }
  0xeb   :  { %v682_v36 = vmax.f32 %v396_v34, 0.0  ;;  %v1132_v37 = vpop.f32.mrb[10].mxu0 }
  0xec   :  { %v411_v38 = vadd.f32 %v1132_v37, %v1578_v2  ;;  %v405_v39 = vpop.f32.mrb[11].mxu0 }
  0xed   :  { %v1599_v40 = vpack.c.bf16 %v683_v35, %v682_v36  ;;  %v406_v41 = vadd.f32 %v1578_v2, %v405_v39 }
  0xee   :  { %v685_v42 = vmax.f32 %v411_v38, 0.0 }
  0xef   :  { %v684_v43 = vmax.f32 %v406_v41, 0.0  ;;  %v1135_v44 = vpop.f32.mrb[12].mxu0 }
  0xf0   :  { %v421_v45 = vadd.f32 %v1135_v44, %v1578_v2  ;;  %v415_v46 = vpop.f32.mrb[13].mxu0 }
  0xf1   :  { %v1603_v47 = vpack.c.bf16 %v685_v42, %v684_v43  ;;  %v416_v48 = vadd.f32 %v1578_v2, %v415_v46 }
  0xf2   :  { %v687_v49 = vmax.f32 %v421_v45, 0.0 }
  0xf3   :  { %v686_v50 = vmax.f32 %v416_v48, 0.0  ;;  %v1138_v51 = vpop.f32.mrb[14].mxu0 }
  0xf4   :  { %v431_v52 = vadd.f32 %v1138_v51, %v1578_v2  ;;  %v425_v53 = vpop.f32.mrb[15].mxu0 }
  0xf5   :  { %v1607_v54 = vpack.c.bf16 %v687_v49, %v686_v50  ;;  %v426_v55 = vadd.f32 %v1578_v2, %v425_v53 }
  0xf6   :  { %v689_v56 = vmax.f32 %v431_v52, 0.0 }
  0xf7   :  { %v688_v57 = vmax.f32 %v426_v55, 0.0  ;;  %v1141_v58 = vpop.f32.mrb[16].mxu0 }
  0xf8   :  { %v441_v59 = vadd.f32 %v1141_v58, %v1578_v2  ;;  %v435_v60 = vpop.f32.mrb[17].mxu0 }
  0xf9   :  { %v1611_v61 = vpack.c.bf16 %v689_v56, %v688_v57  ;;  %v436_v62 = vadd.f32 %v1578_v2, %v435_v60 }
  0xfa   :  { %v691_v63 = vmax.f32 %v441_v59, 0.0 }
  0xfb   :  { %v690_v0 = vmax.f32 %v436_v62, 0.0  ;;  %v1144_v3 = vpop.f32.mrb[18].mxu0 }
  0xfc   :  { %v451_v4 = vadd.f32 %v1144_v3, %v1578_v2  ;;  %v445_v5 = vpop.f32.mrb[19].mxu0 }
  0xfd   :  { %v446_v6 = vadd.f32 %v1578_v2, %v445_v5  ;;  %v1211_v7 = vpack.c.bf16 %v691_v63, %v690_v0 }
  0xfe   :  { %v693_v8 = vmax.f32 %v451_v4, 0.0 }
  0xff   :  { %v692_v9 = vmax.f32 %v446_v6, 0.0  ;;  %v1147_v10 = vpop.f32.mrb[20].mxu0  ;;  %1212 = vmatprep.subr.bf16.mxu1 %v1211_v7 }
 0x100   :  { %v461_v11 = vadd.f32 %v1147_v10, %v1578_v2  ;;  %v455_v12 = vpop.f32.mrb[21].mxu0  ;;  %1214 = vmatpush3.bf16.xpose.msra.mxu1 %v1584_v13 }
 0x101   :  { %v1215_v16 = vpack.c.bf16 %v693_v8, %v692_v9  ;;  %v456_v17 = vadd.f32 %v1578_v2, %v455_v12 }
 0x102   :  { %v695_v18 = vmax.f32 %v461_v11, 0.0 }
 0x103   :  { %v694_v20 = vmax.f32 %v456_v17, 0.0  ;;  %v1150_v21 = vpop.f32.mrb[22].mxu0  ;;  %1216 = vmatprep.subr.bf16.mxu1 %v1215_v16 }
 0x104   :  { %v471_v22 = vadd.f32 %v1150_v21, %v1578_v2  ;;  %v465_v23 = vpop.f32.mrb[23].mxu0 }
 0x105   :  { %v1219_v24 = vpack.c.bf16 %v695_v18, %v694_v20  ;;  %v466_v13 = vadd.f32 %v1578_v2, %v465_v23 }
 0x106   :  { %v697_v25 = vmax.f32 %v471_v22, 0.0 }
 0x107   :  { %v696_v27 = vmax.f32 %v466_v13, 0.0  ;;  %v1153_v28 = vpop.f32.mrb[24].mxu0 }
 0x108   :  { %v481_v29 = vadd.f32 %v1153_v28, %v1578_v2  ;;  %v475_v30 = vpop.f32.mrb[25].mxu0  ;;  %1218 = vmatpush3.bf16.xpose.msra.mxu1 %v1587_v19 }
 0x109   :  { %v1223_v31 = vpack.c.bf16 %v697_v25, %v696_v27  ;;  %v476_v32 = vadd.f32 %v1578_v2, %v475_v30  ;;  %1220 = vmatprep.subr.bf16.mxu1 %v1219_v24 }
 0x10a   :  { %v699_v34 = vmax.f32 %v481_v29, 0.0 }
 0x10b   :  { %v698_v35 = vmax.f32 %v476_v32, 0.0  ;;  %v1156_v36 = vpop.f32.mrb[26].mxu0 }
 0x10c   :  { %v491_v37 = vadd.f32 %v1156_v36, %v1578_v2  ;;  %v485_v38 = vpop.f32.mrb[27].mxu0 }
 0x10d   :  { %v1227_v39 = vpack.c.bf16 %v699_v34, %v698_v35  ;;  %v486_v41 = vadd.f32 %v1578_v2, %v485_v38 }
 0x10e   :  { %v701_v42 = vmax.f32 %v491_v37, 0.0 }
 0x10f   :  { %v700_v43 = vmax.f32 %v486_v41, 0.0  ;;  %v1159_v44 = vpop.f32.mrb[28].mxu0 }
 0x110   :  { %v501_v45 = vadd.f32 %v1159_v44, %v1578_v2  ;;  %v495_v46 = vpop.f32.mrb[29].mxu0  ;;  %1222 = vmatpush3.bf16.xpose.msra.mxu1 %v1591_v26 }
 0x111   :  { %v1231_v19 = vpack.c.bf16 %v701_v42, %v700_v43  ;;  %v496_v48 = vadd.f32 %v1578_v2, %v495_v46  ;;  %1224 = vmatprep.subr.bf16.mxu1 %v1223_v31 }
 0x112   :  { %v703_v49 = vmax.f32 %v501_v45, 0.0 }
 0x113   :  { %v702_v50 = vmax.f32 %v496_v48, 0.0  ;;  %v1162_v51 = vpop.f32.mrb[30].mxu0 }
 0x114   :  { %v511_v52 = vadd.f32 %v1162_v51, %v1578_v2  ;;  %v505_v53 = vpop.f32.mrb[31].mxu0 }
 0x115   :  { %v1235_v55 = vpack.c.bf16 %v703_v49, %v702_v50  ;;  %v506_v56 = vadd.f32 %v1578_v2, %v505_v53 }
 0x116   :  { %v705_v57 = vmax.f32 %v511_v52, 0.0 }
 0x117   :  { %v704_v58 = vmax.f32 %v506_v56, 0.0  ;;  %v1165_v59 = vpop.f32.mrb[32].mxu0 }
 0x118   :  { %v521_v60 = vadd.f32 %v1165_v59, %v1578_v2  ;;  %v515_v62 = vpop.f32.mrb[33].mxu0  ;;  %1226 = vmatpush3.bf16.xpose.msra.mxu1 %v1595_v33 }
 0x119   :  { %v1239_v26 = vpack.c.bf16 %v705_v57, %v704_v58  ;;  %v516_v63 = vadd.f32 %v1578_v2, %v515_v62  ;;  %1228 = vmatprep.subr.bf16.mxu1 %v1227_v39 }
 0x11a   :  { %v707_v0 = vmax.f32 %v521_v60, 0.0 }
 0x11b   :  { %v706_v3 = vmax.f32 %v516_v63, 0.0  ;;  %v1168_v4 = vpop.f32.mrb[34].mxu0 }
 0x11c   :  { %v531_v5 = vadd.f32 %v1168_v4, %v1578_v2  ;;  %v525_v6 = vpop.f32.mrb[35].mxu0 }
 0x11d   :  { %v1638_v7 = vpack.c.bf16 %v707_v0, %v706_v3  ;;  %v526_v8 = vadd.f32 %v1578_v2, %v525_v6 }
 0x11e   :  { %v709_v9 = vmax.f32 %v531_v5, 0.0 }
 0x11f   :  { %v708_v10 = vmax.f32 %v526_v8, 0.0  ;;  %v1171_v11 = vpop.f32.mrb[36].mxu0 }
 0x120   :  { %v541_v12 = vadd.f32 %v1171_v11, %v1578_v2  ;;  %v535_v33 = vpop.f32.mrb[37].mxu0  ;;  %1230 = vmatpush3.bf16.xpose.msra.mxu1 %v1599_v40 }
 0x121   :  { %v1643_v14 = vpack.c.bf16 %v709_v9, %v708_v10  ;;  %v536_v15 = vadd.f32 %v1578_v2, %v535_v33  ;;  %1232 = vmatprep.subr.bf16.mxu1 %v1231_v19 }
 0x122   :  { %v711_v16 = vmax.f32 %v541_v12, 0.0 }
 0x123   :  { %v710_v17 = vmax.f32 %v536_v15, 0.0  ;;  %v1174_v18 = vpop.f32.mrb[38].mxu0 }
 0x124   :  { %v551_v20 = vadd.f32 %v1174_v18, %v1578_v2  ;;  %v545_v21 = vpop.f32.mrb[39].mxu0 }
 0x125   :  { %v1647_v22 = vpack.c.bf16 %v711_v16, %v710_v17  ;;  %v546_v23 = vadd.f32 %v1578_v2, %v545_v21 }
 0x126   :  { %v713_v24 = vmax.f32 %v551_v20, 0.0 }
 0x127   :  { %v712_v13 = vmax.f32 %v546_v23, 0.0  ;;  %v1177_v25 = vpop.f32.mrb[40].mxu0 }
 0x128   :  { %v561_v40 = vadd.f32 %v1177_v25, %v1578_v2  ;;  %v555_v27 = vpop.f32.mrb[41].mxu0  ;;  %1234 = vmatpush3.bf16.xpose.msra.mxu1 %v1603_v47 }
 0x129   :  { %v1652_v28 = vpack.c.bf16 %v713_v24, %v712_v13  ;;  %v556_v29 = vadd.f32 %v1578_v2, %v555_v27  ;;  %1236 = vmatprep.subr.bf16.mxu1 %v1235_v55 }
 0x12a   :  { %v715_v30 = vmax.f32 %v561_v40, 0.0 }
 0x12b   :  { %v714_v31 = vmax.f32 %v556_v29, 0.0  ;;  %v1180_v32 = vpop.f32.mrb[42].mxu0 }
 0x12c   :  { %v571_v34 = vadd.f32 %v1180_v32, %v1578_v2  ;;  %v565_v35 = vpop.f32.mrb[43].mxu0 }
 0x12d   :  { %v1656_v36 = vpack.c.bf16 %v715_v30, %v714_v31  ;;  %v566_v37 = vadd.f32 %v1578_v2, %v565_v35 }
 0x12e   :  { %v717_v38 = vmax.f32 %v571_v34, 0.0 }
 0x12f   :  { %v716_v39 = vmax.f32 %v566_v37, 0.0  ;;  %v1183_v41 = vpop.f32.mrb[44].mxu0 }
 0x130   :  { %v581_v47 = vadd.f32 %v1183_v41, %v1578_v2  ;;  %v575_v42 = vpop.f32.mrb[45].mxu0  ;;  %1238 = vmatpush3.bf16.xpose.msra.mxu1 %v1607_v54 }
 0x131   :  { %v1661_v43 = vpack.c.bf16 %v717_v38, %v716_v39  ;;  %v576_v44 = vadd.f32 %v1578_v2, %v575_v42  ;;  %1240 = vmatprep.subr.bf16.mxu1 %v1239_v26 }
 0x132   :  { %v719_v45 = vmax.f32 %v581_v47, 0.0 }
 0x133   :  { %v718_v46 = vmax.f32 %v576_v44, 0.0  ;;  %v1186_v19 = vpop.f32.mrb[46].mxu0 }
 0x134   :  { %v591_v48 = vadd.f32 %v1186_v19, %v1578_v2  ;;  %v585_v49 = vpop.f32.mrb[47].mxu0 }
 0x135   :  { %v1665_v50 = vpack.c.bf16 %v719_v45, %v718_v46  ;;  %v586_v51 = vadd.f32 %v1578_v2, %v585_v49 }
 0x136   :  { %v721_v52 = vmax.f32 %v591_v48, 0.0 }
 0x137   :  { %v720_v53 = vmax.f32 %v586_v51, 0.0  ;;  %v1189_v55 = vpop.f32.mrb[48].mxu0 }
 0x138   :  { %v601_v54 = vadd.f32 %v1189_v55, %v1578_v2  ;;  %v595_v56 = vpop.f32.mrb[49].mxu0  ;;  %1242 = vmatpush3.bf16.xpose.msra.mxu1 %v1611_v61 }
 0x139   :  { %v1670_v57 = vpack.c.bf16 %v721_v52, %v720_v53  ;;  %v596_v58 = vadd.f32 %v1578_v2, %v595_v56 }
 0x13a   :  { %v723_v59 = vmax.f32 %v601_v54, 0.0 }
 0x13b   :  { %v722_v60 = vmax.f32 %v596_v58, 0.0  ;;  %v1192_v62 = vpop.f32.mrb[50].mxu0  ;;  %v1279_v58 = vmov 1983009808  }
 0x13c   :  { %v611_v26 = vadd.f32 %v1192_v62, %v1578_v2  ;;  %v605_v63 = vpop.f32.mrb[51].mxu0 }
 0x13d   :  { %v1243_v0 = vpack.c.bf16 %v723_v59, %v722_v60  ;;  %v606_v3 = vadd.f32 %v1578_v2, %v605_v63  ;;  %v894_v59 = vunpack.c.l.s4 %v1279_v58 }
 0x13e   :  { %v725_v4 = vmax.f32 %v611_v26, 0.0 }
 0x13f   :  { %v724_v5 = vmax.f32 %v606_v3, 0.0  ;;  %1078 = vmatmul.mubr.f32.vlgmr.msra.gmra.mrb[0].mxu1 %v1572_v1  ;;  %1244 = vmatprep.subr.bf16.mxu1 %v1243_v0  ;;  %v1195_v6 = vpop.f32.mrb[52].mxu0  ;;  %v895_v60 = vunpack.c.0.s8 %v894_v59 }
 0x140   :  { %1246 = vmatpush3.bf16.xpose.msra.mxu1 %v1638_v7  ;;  %v621_v61 = vadd.f32 %v1195_v6, %v1578_v2  ;;  %v615_v8 = vpop.f32.mrb[53].mxu0  ;;  %1111 = vmatprep.mubr.f32.mxu1 %v1572_v1 }
 0x141   :  { %v1247_v9 = vpack.c.bf16 %v725_v4, %v724_v5  ;;  %v616_v10 = vadd.f32 %v1578_v2, %v615_v8 }
 0x142   :  { %v727_v11 = vmax.f32 %v621_v61, 0.0 }
 0x143   :  { %1248 = vmatprep.subr.bf16.mxu1 %v1247_v9  ;;  %v726_v12 = vmax.f32 %v616_v10, 0.0  ;;  %v1198_v33 = vpop.f32.mrb[54].mxu0 }
 0x144   :  { %v631_v15 = vadd.f32 %v1198_v33, %v1578_v2  ;;  %v625_v16 = vpop.f32.mrb[55].mxu0 }
 0x145   :  { %v1251_v17 = vpack.c.bf16 %v727_v11, %v726_v12  ;;  %v626_v18 = vadd.f32 %v1578_v2, %v625_v16 }
 0x146   :  { %v729_v20 = vmax.f32 %v631_v15, 0.0 }
 0x147   :  { %v728_v7 = vmax.f32 %v626_v18, 0.0  ;;  %v1201_v21 = vpop.f32.mrb[56].mxu0 }
 0x148   :  { %1250 = vmatpush3.bf16.xpose.msra.mxu1 %v1643_v14  ;;  %v641_v23 = vadd.f32 %v1201_v21, %v1578_v2  ;;  %v635_v24 = vpop.f32.mrb[57].mxu0 }
 0x149   :  { %1252 = vmatprep.subr.bf16.mxu1 %v1251_v17  ;;  %v1255_v13 = vpack.c.bf16 %v729_v20, %v728_v7  ;;  %v636_v25 = vadd.f32 %v1578_v2, %v635_v24 }
 0x14a   :  { %v731_v40 = vmax.f32 %v641_v23, 0.0 }
 0x14b   :  { %v730_v27 = vmax.f32 %v636_v25, 0.0  ;;  %v1204_v29 = vpop.f32.mrb[58].mxu0 }
 0x14c   :  { %v651_v30 = vadd.f32 %v1204_v29, %v1578_v2  ;;  %v645_v31 = vpop.f32.mrb[59].mxu0 }
 0x14d   :  { %v1259_v32 = vpack.c.bf16 %v731_v40, %v730_v27  ;;  %v646_v34 = vadd.f32 %v1578_v2, %v645_v31 }
 0x14e   :  { %v733_v35 = vmax.f32 %v651_v30, 0.0 }
 0x14f   :  { %v732_v37 = vmax.f32 %v646_v34, 0.0  ;;  %v1207_v38 = vpop.f32.mrb[60].mxu0 }
 0x150   :  { %1254 = vmatpush3.bf16.xpose.msra.mxu1 %v1647_v22  ;;  %v661_v14 = vadd.f32 %v1207_v38, %v1578_v2  ;;  %v655_v39 = vpop.f32.mrb[61].mxu0 }
 0x151   :  { %1256 = vmatprep.subr.bf16.mxu1 %v1255_v13  ;;  %v1263_v41 = vpack.c.bf16 %v733_v35, %v732_v37  ;;  %v656_v47 = vadd.f32 %v1578_v2, %v655_v39 }
 0x152   :  { %v735_v42 = vmax.f32 %v661_v14, 0.0 }
 0x153   :  { %v734_v44 = vmax.f32 %v656_v47, 0.0  ;;  %v1210_v45 = vpop.f32.mrb[62].mxu0 }
 0x154   :  { %v671_v46 = vadd.f32 %v1210_v45, %v1578_v2  ;;  %v665_v19 = vpop.f32.mrb[63].mxu0 }
 0x155   :  { %v1267_v48 = vpack.c.bf16 %v735_v42, %v734_v44  ;;  %v666_v49 = vadd.f32 %v1578_v2, %v665_v19 }
 0x156   :  { %v737_v51 = vmax.f32 %v671_v46, 0.0 }
 0x157   :  { %v736_v52 = vmax.f32 %v666_v49, 0.0 }
 0x158   :  { %1258 = vmatpush3.bf16.xpose.msra.mxu1 %v1652_v28 }
 0x159   :  { %1260 = vmatprep.subr.bf16.mxu1 %v1259_v32  ;;  %v1271_v22 = vpack.c.bf16 %v737_v51, %v736_v52 }
 0x160   :  { %1262 = vmatpush3.bf16.xpose.msra.mxu1 %v1656_v36  ;;  %v896_v36 = vlaneseq }
 0x161   :  { %1264 = vmatprep.subr.bf16.mxu1 %v1263_v41 }
 0x162   :  { %v743_v2 = vpop.permute.xlu0 %742  ;;  %v897_v62 = vshrl.u32 %v896_v36, 7 }
 0x168   :  { %1266 = vmatpush3.bf16.xpose.msra.mxu1 %v1661_v43 }
 0x169   :  { %1268 = vmatprep.subr.bf16.mxu1 %v1267_v48 }
 0x170   :  { %1270 = vmatpush3.bf16.xpose.msra.mxu1 %v1665_v50  ;;  %v898_v50 = vsub.s32 %v895_v60, %v897_v62 }
 0x171   :  { %1272 = vmatprep.subr.bf16.mxu1 %v1271_v22 }
 0x178   :  { %1274 = vmatpush3.bf16.xpose.msra.mxu1 %v1670_v57 }
 0x17f   :  { %1112 = vmatmul.mubr.f32.vlgmr.msra.gmra.mrb[2].mxu1 %v1572_v1 }
 0x212   :  { %v811_v53 = vpop.f32.mrb[0].mxu1 }
 0x213   :  { %v812_v55 = vadd.f32 %v811_v53, %v743_v2  ;;  %v813_v54 = vpop.f32.mrb[1].mxu1 }
 0x214   :  { %v814_v28 = vadd.f32 %v813_v54, %v743_v2 }
 0x216   :  { %v891_v56 = vcombine.low %v812_v55, %v814_v28 }
 0x218   :  { %v899_v57 = vrot.slane %v891_v56, %v898_v50 }
 0x252   :  { %v882_v43 = vpop.f32.mrb[2].mxu1 }
 0x253   :  { %v883_v26 = vadd.f32 %v882_v43, %v743_v2  ;;  %v884_v63 = vpop.f32.mrb[3].mxu1 }
 0x254   :  { %v885_v0 = vadd.f32 %v884_v63, %v743_v2 }
 0x256   :  { %v892_v3 = vcombine.low %v883_v26, %v885_v0 }
 0x258   :  { %v906_v4 = vrot.slane %v892_v3, %v898_v50 }
 0x25a   :  { %v907_v1 = vcombine.low %v899_v57, %v906_v4 }
 0x25c   :  { %909 = vst [vmem:[%s1706_s5] sm:$0xff] %v907_v1 }

// kernel: squeeze.0
= control target key start
LH: loop header
LB: loop body
LE: loop exit
PB: predicated region body
PF: predicated region fallthrough
CT: control target
= control target key end

     0   :  { %s2178_s8 = smov 125   ;;  %s2179_s9 = smov 126   ;;  %vm7_vm0 = vcmask 7168   ;;  %s4365_s0 = inlined_call_operand.vmem [shape: f32[512], index: 0, kind: input, shape index: {}]   ;;  %s4366_s1 = inlined_call_operand.vmem [shape: f32[2,1,256], index: 1, kind: output, shape index: {}]  }
   0x1   :  { %v4_v0 = vld [vmem:[%s4365_s0] sm:$0xf]  ;;  %s2177_s0 = smov 127   ;;  %s2180_s10 = smov 124  }
   0x2   :  { %5 = vst [vmem:[#allocation0] sm:$0xf] %v4_v0  ;;  %s2181_s11 = smov 123   ;;  %s2182_s12 = smov 122  }
   0x3   :  { %s2183_s13 = smov 121   ;;  %s2184_s14 = smov 120  }
   0x4   :  { %s2185_s15 = smov 119   ;;  %s2186_s16 = smov 118  }
   0x5   :  { %s2187_s17 = smov 117   ;;  %s2188_s18 = smov 116  }
   0x6   :  { %s2189_s19 = smov 115   ;;  %s2190_s20 = smov 114  }
   0x7   :  { %s2191_s21 = smov 113   ;;  %s2192_s22 = smov 112  }
   0x8   :  { %s2193_s23 = smov 111   ;;  %s2194_s24 = smov 110  }
   0x9   :  { %v15_v1 = vld [vmem:[#allocation0] sm:$0xf]   ;;  %s2195_s25 = smov 109   ;;  %s2196_s26 = smov 108  }
   0xa   :  { %v39_v2 = vld [vmem:[#allocation0] sm:$0xf]   ;;  %16 = vrot.lane.b32.xlu0 %v15_v1, %s2177_s0  ;;  %s2197_s27 = smov 107   ;;  %s2198_s28 = smov 106  }
   0xb   :  { %40 = vrot.lane.b32.xlu1 %v39_v2, %s2178_s8  ;;  %v27_v3 = vld [vmem:[#allocation0] sm:$0xf]   ;;  %s2199_s29 = smov 105   ;;  %s2200_s30 = smov 104  }
   0xc   :  { %v51_v4 = vld [vmem:[#allocation0] sm:$0xf]   ;;  %s2201_s2 = smov 103   ;;  %s2202_s3 = smov 102  }
   0xd   :  { %v63_v5 = vld [vmem:[#allocation0] sm:$0xf]   ;;  %s2203_s4 = smov 101   ;;  %s2204_s5 = smov 100  }
   0xe   :  { %28 = vrot.lane.b32.xlu0 %v27_v3, %s2179_s9  ;;  %v75_v6 = vld [vmem:[#allocation0] sm:$0xf]   ;;  %s2205_s6 = smov 99   ;;  %s2206_s7 = smov 98  }
   0xf   :  { %52 = vrot.lane.b32.xlu1 %v51_v4, %s2180_s10  ;;  %v87_v7 = vld [vmem:[#allocation0] sm:$0xf]   ;;  %s2207_s0 = smov 97   ;;  %s2208_s8 = smov 96  }
  0x10   :  { %v99_v8 = vld [vmem:[#allocation0] sm:$0xf]   ;;  %s2209_s9 = smov 95   ;;  %s2210_s10 = smov 94  }
  0x11   :  { %v111_v9 = vld [vmem:[#allocation0] sm:$0xf]  }
  0x12   :  { %64 = vrot.lane.b32.xlu0 %v63_v5, %s2181_s11  ;;  %v123_v10 = vld [vmem:[#allocation0] sm:$0xf]   ;;  %s2211_s11 = smov 93  }
  0x13   :  { %76 = vrot.lane.b32.xlu1 %v75_v6, %s2182_s12  ;;  %v135_v11 = vld [vmem:[#allocation0] sm:$0xf]   ;;  %s2212_s12 = smov 92  }
  0x14   :  { %v147_v12 = vld [vmem:[#allocation0] sm:$0xf]  }
  0x15   :  { %v159_v13 = vld [vmem:[#allocation0] sm:$0xf]  }
  0x16   :  { %88 = vrot.lane.b32.xlu0 %v87_v7, %s2183_s13  ;;  %v171_v14 = vld [vmem:[#allocation0] sm:$0xf]   ;;  %s2213_s13 = smov 91  }
  0x17   :  { %100 = vrot.lane.b32.xlu1 %v99_v8, %s2184_s14  ;;  %v183_v15 = vld [vmem:[#allocation0] sm:$0xf]   ;;  %s2214_s14 = smov 90  }
  0x18   :  { %v195_v16 = vld [vmem:[#allocation0] sm:$0xf]  }
  0x19   :  { %v207_v17 = vld [vmem:[#allocation0] sm:$0xf]  }
  0x1a   :  { %112 = vrot.lane.b32.xlu0 %v111_v9, %s2185_s15  ;;  %v219_v18 = vld [vmem:[#allocation0] sm:$0xf]   ;;  %s2215_s15 = smov 89  }
  0x1b   :  { %124 = vrot.lane.b32.xlu1 %v123_v10, %s2186_s16  ;;  %v231_v19 = vld [vmem:[#allocation0] sm:$0xf]   ;;  %s2216_s16 = smov 88  }
  0x1c   :  { %v243_v20 = vld [vmem:[#allocation0] sm:$0xf]  }
  0x1d   :  { %v255_v21 = vld [vmem:[#allocation0] sm:$0xf]  }
  0x1e   :  { %136 = vrot.lane.b32.xlu0 %v135_v11, %s2187_s17  ;;  %v267_v22 = vld [vmem:[#allocation0] sm:$0xf]   ;;  %s2217_s17 = smov 87  }
  0x1f   :  { %148 = vrot.lane.b32.xlu1 %v147_v12, %s2188_s18  ;;  %v279_v23 = vld [vmem:[#allocation0] sm:$0xf]   ;;  %s2218_s18 = smov 86  }
  0x20   :  { %v291_v24 = vld [vmem:[#allocation0] sm:$0xf]  }
  0x21   :  { %v303_v25 = vld [vmem:[#allocation0] sm:$0xf]  }
  0x22   :  { %160 = vrot.lane.b32.xlu0 %v159_v13, %s2189_s19  ;;  %v315_v26 = vld [vmem:[#allocation0] sm:$0xf]   ;;  %s2219_s19 = smov 85  }
  0x23   :  { %172 = vrot.lane.b32.xlu1 %v171_v14, %s2190_s20  ;;  %v327_v27 = vld [vmem:[#allocation0] sm:$0xf]   ;;  %s2220_s20 = smov 84  }
  0x24   :  { %v339_v28 = vld [vmem:[#allocation0] sm:$0xf]  }
  0x25   :  { %v351_v29 = vld [vmem:[#allocation0] sm:$0xf]  }
  0x26   :  { %184 = vrot.lane.b32.xlu0 %v183_v15, %s2191_s21  ;;  %v363_v30 = vld [vmem:[#allocation0] sm:$0xf]   ;;  %s2221_s21 = smov 83  }
  0x27   :  { %196 = vrot.lane.b32.xlu1 %v195_v16, %s2192_s22  ;;  %v375_v31 = vld [vmem:[#allocation0] sm:$0xf]   ;;  %s2222_s22 = smov 82  }
  0x28   :  { %v387_v32 = vld [vmem:[#allocation0] sm:$0xf]  }
  0x29   :  { %v399_v33 = vld [vmem:[#allocation0] sm:$0xf]  }
  0x2a   :  { %208 = vrot.lane.b32.xlu0 %v207_v17, %s2193_s23  ;;  %v411_v34 = vld [vmem:[#allocation0] sm:$0xf]   ;;  %s2223_s23 = smov 81  }
  0x2b   :  { %220 = vrot.lane.b32.xlu1 %v219_v18, %s2194_s24  ;;  %v423_v35 = vld [vmem:[#allocation0] sm:$0xf]   ;;  %s2224_s24 = smov 80  }
  0x2c   :  { %v435_v36 = vld [vmem:[#allocation0] sm:$0xf]  }
  0x2d   :  { %v447_v37 = vld [vmem:[#allocation0] sm:$0xf]  }
  0x2e   :  { %232 = vrot.lane.b32.xlu0 %v231_v19, %s2195_s25  ;;  %v459_v38 = vld [vmem:[#allocation0] sm:$0xf]   ;;  %s2225_s25 = smov 79  }
  0x2f   :  { %244 = vrot.lane.b32.xlu1 %v243_v20, %s2196_s26  ;;  %v471_v39 = vld [vmem:[#allocation0] sm:$0xf]   ;;  %s2226_s26 = smov 78  }
  0x30   :  { %v483_v40 = vld [vmem:[#allocation0] sm:$0xf]  }
  0x31   :  { %v495_v41 = vld [vmem:[#allocation0] sm:$0xf]  }
  0x32   :  { %256 = vrot.lane.b32.xlu0 %v255_v21, %s2197_s27  ;;  %v507_v42 = vld [vmem:[#allocation0] sm:$0xf]   ;;  %s2227_s27 = smov 77  }
  0x33   :  { %268 = vrot.lane.b32.xlu1 %v267_v22, %s2198_s28  ;;  %v519_v43 = vld [vmem:[#allocation0] sm:$0xf]   ;;  %s2228_s28 = smov 76  }
  0x34   :  { %v531_v44 = vld [vmem:[#allocation0] sm:$0xf]  }
  0x35   :  { %v543_v45 = vld [vmem:[#allocation0] sm:$0xf]  }
  0x36   :  { %280 = vrot.lane.b32.xlu0 %v279_v23, %s2199_s29  ;;  %v555_v46 = vld [vmem:[#allocation0] sm:$0xf]   ;;  %s2229_s29 = smov 75  }
  0x37   :  { %292 = vrot.lane.b32.xlu1 %v291_v24, %s2200_s30  ;;  %v567_v47 = vld [vmem:[#allocation0] sm:$0xf]   ;;  %s2230_s30 = smov 74  }
  0x38   :  { %v579_v48 = vld [vmem:[#allocation0] sm:$0xf]  }
  0x39   :  { %v591_v49 = vld [vmem:[#allocation0] sm:$0xf]  }
  0x3a   :  { %304 = vrot.lane.b32.xlu0 %v303_v25, %s2201_s2  ;;  %v603_v50 = vld [vmem:[#allocation0] sm:$0xf]   ;;  %s2231_s2 = smov 73  }
  0x3b   :  { %316 = vrot.lane.b32.xlu1 %v315_v26, %s2202_s3  ;;  %v615_v51 = vld [vmem:[#allocation0] sm:$0xf]   ;;  %s2232_s3 = smov 72  }
  0x3c   :  { %v627_v52 = vld [vmem:[#allocation0] sm:$0xf]  }
  0x3d   :  { %v639_v53 = vld [vmem:[#allocation0] sm:$0xf]  }
  0x3e   :  { %328 = vrot.lane.b32.xlu0 %v327_v27, %s2203_s4  ;;  %v651_v54 = vld [vmem:[#allocation0] sm:$0xf]   ;;  %s2233_s4 = smov 71  }
  0x3f   :  { %340 = vrot.lane.b32.xlu1 %v339_v28, %s2204_s5  ;;  %v663_v55 = vld [vmem:[#allocation0] sm:$0xf]   ;;  %s2234_s5 = smov 70  }
  0x40   :  { %v675_v56 = vld [vmem:[#allocation0] sm:$0xf]  }
  0x41   :  { %v687_v57 = vld [vmem:[#allocation0] sm:$0xf]  }
  0x42   :  { %352 = vrot.lane.b32.xlu0 %v351_v29, %s2205_s6  ;;  %v699_v58 = vld [vmem:[#allocation0] sm:$0xf]   ;;  %s2299_s6 = smov 5  }
  0x43   :  { %364 = vrot.lane.b32.xlu1 %v363_v30, %s2206_s7  ;;  %v711_v59 = vld [vmem:[#allocation0] sm:$0xf]   ;;  %s2300_s7 = smov 4  }
  0x44   :  { %v723_v60 = vld [vmem:[#allocation0] sm:$0xf]  }
  0x45   :  { %v735_v63 = vld [vmem:[#allocation0] sm:$0xf]  }
  0x46   :  { %376 = vrot.lane.b32.xlu0 %v375_v31, %s2207_s0  ;;  %v747_v0 = vld [vmem:[#allocation0] sm:$0xf]  }
  0x47   :  { %388 = vrot.lane.b32.xlu1 %v387_v32, %s2208_s8  ;;  %v759_v3 = vld [vmem:[#allocation0] sm:$0xf]  }
  0x48   :  { %v771_v4 = vld [vmem:[#allocation0] sm:$0xf]  }
  0x49   :  { %v783_v7 = vld [vmem:[#allocation0] sm:$0xf]  }
  0x4a   :  { %400 = vrot.lane.b32.xlu0 %v399_v33, %s2209_s9  ;;  %s2237_s9 = smov 67   ;;  %v795_v8 = vld [vmem:[#allocation0] sm:$0xf]  }
  0x4b   :  { %412 = vrot.lane.b32.xlu1 %v411_v34, %s2210_s10  ;;  %s2238_s10 = smov 66   ;;  %v807_v11 = vld [vmem:[#allocation0] sm:$0xf]  }
  0x4c   :  { %v819_v12 = vld [vmem:[#allocation0] sm:$0xf]  }
  0x4d   :  { %v831_v15 = vld [vmem:[#allocation0] sm:$0xf]  }
  0x4e   :  { %424 = vrot.lane.b32.xlu0 %v423_v35, %s2211_s11  ;;  %v843_v16 = vld [vmem:[#allocation0] sm:$0xf]   ;;  %s2303_s11 = smov 1  }
  0x4f   :  { %436 = vrot.lane.b32.xlu1 %v435_v36, %s2212_s12  ;;  %v855_v19 = vld [vmem:[#allocation0] sm:$0xf]  }
  0x50   :  { %v867_v20 = vld [vmem:[#allocation0] sm:$0xf]  }
  0x51   :  { %v879_v23 = vld [vmem:[#allocation0] sm:$0xf]  }
  0x52   :  { %448 = vrot.lane.b32.xlu0 %v447_v37, %s2213_s13  ;;  %v891_v24 = vld [vmem:[#allocation0] sm:$0xf]  }
  0x53   :  { %460 = vrot.lane.b32.xlu1 %v459_v38, %s2214_s14  ;;  %v903_v27 = vld [vmem:[#allocation0] sm:$0xf]  }
  0x54   :  { %v915_v28 = vld [vmem:[#allocation0] sm:$0xf]  }
  0x55   :  { %v927_v31 = vld [vmem:[#allocation0] sm:$0xf]  }
  0x56   :  { %472 = vrot.lane.b32.xlu0 %v471_v39, %s2215_s15  ;;  %s2241_s15 = smov 63   ;;  %v939_v32 = vld [vmem:[#allocation0] sm:$0xf]  }
  0x57   :  { %484 = vrot.lane.b32.xlu1 %v483_v40, %s2216_s16  ;;  %s2242_s16 = smov 62   ;;  %v951_v35 = vld [vmem:[#allocation0] sm:$0xf]  }
  0x58   :  { %v963_v36 = vld [vmem:[#allocation0] sm:$0xf]  }
  0x59   :  { %v975_v39 = vld [vmem:[#allocation0] sm:$0xf]  }
  0x5a   :  { %496 = vrot.lane.b32.xlu0 %v495_v41, %s2217_s17  ;;  %v987_v40 = vld [vmem:[#allocation0] sm:$0xf]   ;;  %s2297_s17 = smov 7  }
  0x5b   :  { %508 = vrot.lane.b32.xlu1 %v507_v42, %s2218_s18  ;;  %s2298_s18 = smov 6  }
  0x5e   :  { %520 = vrot.lane.b32.xlu0 %v519_v43, %s2219_s19  ;;  %v999_v43 = vld [vmem:[#allocation0] sm:$0xf]  }
  0x5f   :  { %532 = vrot.lane.b32.xlu1 %v531_v44, %s2220_s20  ;;  %v1011_v44 = vld [vmem:[#allocation0] sm:$0xf]  }
  0x62   :  { %544 = vrot.lane.b32.xlu0 %v543_v45, %s2221_s21  ;;  %s2235_s21 = smov 69  }
  0x63   :  { %556 = vrot.lane.b32.xlu1 %v555_v46, %s2222_s22  ;;  %s2236_s22 = smov 68  }
  0x66   :  { %568 = vrot.lane.b32.xlu0 %v567_v47, %s2223_s23  ;;  %v1023_v47 = vld [vmem:[#allocation0] sm:$0xf]   ;;  %s2301_s23 = smov 3  }
  0x67   :  { %580 = vrot.lane.b32.xlu1 %v579_v48, %s2224_s24  ;;  %v1035_v48 = vld [vmem:[#allocation0] sm:$0xf]   ;;  %s2302_s24 = smov 2  }
  0x6a   :  { %592 = vrot.lane.b32.xlu0 %v591_v49, %s2225_s25 }
  0x6b   :  { %604 = vrot.lane.b32.xlu1 %v603_v50, %s2226_s26 }
  0x6e   :  { %616 = vrot.lane.b32.xlu0 %v615_v51, %s2227_s27  ;;  %s2239_s27 = smov 65   ;;  %v1047_v51 = vld [vmem:[#allocation0] sm:$0xf]  }
  0x6f   :  { %628 = vrot.lane.b32.xlu1 %v627_v52, %s2228_s28  ;;  %s2240_s28 = smov 64   ;;  %v1059_v52 = vld [vmem:[#allocation0] sm:$0xf]  }
  0x72   :  { %640 = vrot.lane.b32.xlu0 %v639_v53, %s2229_s29 }
  0x73   :  { %652 = vrot.lane.b32.xlu1 %v651_v54, %s2230_s30 }
  0x76   :  { %664 = vrot.lane.b32.xlu0 %v663_v55, %s2231_s2  ;;  %v1071_v55 = vld [vmem:[#allocation0] sm:$0xf]  }
  0x77   :  { %676 = vrot.lane.b32.xlu1 %v675_v56, %s2232_s3  ;;  %v1083_v56 = vld [vmem:[#allocation0] sm:$0xf]  }
  0x7a   :  { %688 = vrot.lane.b32.xlu0 %v687_v57, %s2233_s4  ;;  %s2243_s4 = smov 61  }
  0x7b   :  { %700 = vrot.lane.b32.xlu1 %v699_v58, %s2234_s5  ;;  %s2244_s5 = smov 60  }
  0x7c   :  { %v17_v61 = vpop.permute.xlu0 %16  }
  0x7d   :  { %v41_v62 = vpop.permute.xlu1 %40   ;;  %1542 = vst.msk [vmem:[%s4366_s1 + $0x1] sm:$0x1] %vm7_vm0, %v17_v61   ;;  %1543 = vst.msk [vmem:[%s4366_s1 + $0x80] sm:$0x2] %vm7_vm0, %v17_v61  }
  0x7e   :  { %1544 = vst.msk [vmem:[%s4366_s1 + $0xff] sm:$0x4] %vm7_vm0, %v17_v61   ;;  %1545 = vst.msk [vmem:[%s4366_s1 + $0x17e] sm:$0x8] %vm7_vm0, %v17_v61   ;;  %712 = vrot.lane.b32.xlu0 %v711_v59, %s2235_s21  ;;  %s2245_s21 = smov 59  }
  0x7f   :  { %1550 = vst.msk [vmem:[%s4366_s1 + $0x3] sm:$0x1] %vm7_vm0, %v41_v62   ;;  %1551 = vst.msk [vmem:[%s4366_s1 + $0x82] sm:$0x2] %vm7_vm0, %v41_v62   ;;  %724 = vrot.lane.b32.xlu1 %v723_v60, %s2236_s22  ;;  %s2246_s22 = smov 58  }
  0x80   :  { %1552 = vst.msk [vmem:[%s4366_s1 + $0x101] sm:$0x4] %vm7_vm0, %v41_v62   ;;  %1553 = vst.msk [vmem:[%s4366_s1 + $0x180] sm:$0x8] %vm7_vm0, %v41_v62   ;;  %v29_v1 = vpop.permute.xlu0 %28   ;;  %v1095_v59 = vld [vmem:[#allocation0] sm:$0xf]  }
  0x81   :  { %v53_v2 = vpop.permute.xlu1 %52   ;;  %1546 = vst.msk [vmem:[%s4366_s1 + $0x2] sm:$0x1] %vm7_vm0, %v29_v1   ;;  %1547 = vst.msk [vmem:[%s4366_s1 + $0x81] sm:$0x2] %vm7_vm0, %v29_v1   ;;  %v1107_v60 = vld [vmem:[#allocation0] sm:$0xf]  }
  0x82   :  { %1548 = vst.msk [vmem:[%s4366_s1 + $0x100] sm:$0x4] %vm7_vm0, %v29_v1   ;;  %1549 = vst.msk [vmem:[%s4366_s1 + $0x17f] sm:$0x8] %vm7_vm0, %v29_v1   ;;  %736 = vrot.lane.b32.xlu0 %v735_v63, %s2237_s9  ;;  %s2247_s9 = smov 57  }
  0x83   :  { %1554 = vst.msk [vmem:[%s4366_s1 + $0x4] sm:$0x1] %vm7_vm0, %v53_v2   ;;  %1555 = vst.msk [vmem:[%s4366_s1 + $0x83] sm:$0x2] %vm7_vm0, %v53_v2   ;;  %748 = vrot.lane.b32.xlu1 %v747_v0, %s2238_s10  ;;  %s2248_s10 = smov 56  }
  0x84   :  { %1556 = vst.msk [vmem:[%s4366_s1 + $0x102] sm:$0x4] %vm7_vm0, %v53_v2   ;;  %1557 = vst.msk [vmem:[%s4366_s1 + $0x181] sm:$0x8] %vm7_vm0, %v53_v2   ;;  %v65_v5 = vpop.permute.xlu0 %64   ;;  %v1119_v63 = vld [vmem:[#allocation0] sm:$0xf]  }
  0x85   :  { %v77_v6 = vpop.permute.xlu1 %76   ;;  %1558 = vst.msk [vmem:[%s4366_s1 + $0x5] sm:$0x1] %vm7_vm0, %v65_v5   ;;  %1559 = vst.msk [vmem:[%s4366_s1 + $0x84] sm:$0x2] %vm7_vm0, %v65_v5   ;;  %v1131_v0 = vld [vmem:[#allocation0] sm:$0xf]  }
  0x86   :  { %1560 = vst.msk [vmem:[%s4366_s1 + $0x103] sm:$0x4] %vm7_vm0, %v65_v5   ;;  %1561 = vst.msk [vmem:[%s4366_s1 + $0x182] sm:$0x8] %vm7_vm0, %v65_v5   ;;  %760 = vrot.lane.b32.xlu0 %v759_v3, %s2239_s27  ;;  %s2249_s27 = smov 55  }
  0x87   :  { %1562 = vst.msk [vmem:[%s4366_s1 + $0x6] sm:$0x1] %vm7_vm0, %v77_v6   ;;  %1563 = vst.msk [vmem:[%s4366_s1 + $0x85] sm:$0x2] %vm7_vm0, %v77_v6   ;;  %772 = vrot.lane.b32.xlu1 %v771_v4, %s2240_s28  ;;  %s2250_s28 = smov 54  }
  0x88   :  { %1564 = vst.msk [vmem:[%s4366_s1 + $0x104] sm:$0x4] %vm7_vm0, %v77_v6   ;;  %1565 = vst.msk [vmem:[%s4366_s1 + $0x183] sm:$0x8] %vm7_vm0, %v77_v6   ;;  %v89_v9 = vpop.permute.xlu0 %88   ;;  %v1143_v3 = vld [vmem:[#allocation0] sm:$0xf]  }
  0x89   :  { %v101_v10 = vpop.permute.xlu1 %100   ;;  %1566 = vst.msk [vmem:[%s4366_s1 + $0x7] sm:$0x1] %vm7_vm0, %v89_v9   ;;  %1567 = vst.msk [vmem:[%s4366_s1 + $0x86] sm:$0x2] %vm7_vm0, %v89_v9   ;;  %v1155_v4 = vld [vmem:[#allocation0] sm:$0xf]  }
  0x8a   :  { %1568 = vst.msk [vmem:[%s4366_s1 + $0x105] sm:$0x4] %vm7_vm0, %v89_v9   ;;  %1569 = vst.msk [vmem:[%s4366_s1 + $0x184] sm:$0x8] %vm7_vm0, %v89_v9   ;;  %784 = vrot.lane.b32.xlu0 %v783_v7, %s2241_s15  ;;  %s2251_s15 = smov 53  }
  0x8b   :  { %1570 = vst.msk [vmem:[%s4366_s1 + $0x8] sm:$0x1] %vm7_vm0, %v101_v10   ;;  %1571 = vst.msk [vmem:[%s4366_s1 + $0x87] sm:$0x2] %vm7_vm0, %v101_v10   ;;  %796 = vrot.lane.b32.xlu1 %v795_v8, %s2242_s16  ;;  %s2252_s16 = smov 52  }
  0x8c   :  { %1572 = vst.msk [vmem:[%s4366_s1 + $0x106] sm:$0x4] %vm7_vm0, %v101_v10   ;;  %1573 = vst.msk [vmem:[%s4366_s1 + $0x185] sm:$0x8] %vm7_vm0, %v101_v10   ;;  %v113_v13 = vpop.permute.xlu0 %112   ;;  %v1167_v7 = vld [vmem:[#allocation0] sm:$0xf]  }
  0x8d   :  { %v125_v14 = vpop.permute.xlu1 %124   ;;  %1574 = vst.msk [vmem:[%s4366_s1 + $0x9] sm:$0x1] %vm7_vm0, %v113_v13   ;;  %1575 = vst.msk [vmem:[%s4366_s1 + $0x88] sm:$0x2] %vm7_vm0, %v113_v13   ;;  %v1179_v8 = vld [vmem:[#allocation0] sm:$0xf]  }
  0x8e   :  { %1576 = vst.msk [vmem:[%s4366_s1 + $0x107] sm:$0x4] %vm7_vm0, %v113_v13   ;;  %1577 = vst.msk [vmem:[%s4366_s1 + $0x186] sm:$0x8] %vm7_vm0, %v113_v13   ;;  %808 = vrot.lane.b32.xlu0 %v807_v11, %s2243_s4  ;;  %s2253_s4 = smov 51  }
  0x8f   :  { %1578 = vst.msk [vmem:[%s4366_s1 + $0xa] sm:$0x1] %vm7_vm0, %v125_v14   ;;  %1579 = vst.msk [vmem:[%s4366_s1 + $0x89] sm:$0x2] %vm7_vm0, %v125_v14   ;;  %820 = vrot.lane.b32.xlu1 %v819_v12, %s2244_s5  ;;  %s2254_s5 = smov 50  }
  0x90   :  { %1580 = vst.msk [vmem:[%s4366_s1 + $0x108] sm:$0x4] %vm7_vm0, %v125_v14   ;;  %1581 = vst.msk [vmem:[%s4366_s1 + $0x187] sm:$0x8] %vm7_vm0, %v125_v14   ;;  %v137_v17 = vpop.permute.xlu0 %136   ;;  %v1191_v11 = vld [vmem:[#allocation0] sm:$0xf]  }
  0x91   :  { %v149_v18 = vpop.permute.xlu1 %148   ;;  %1582 = vst.msk [vmem:[%s4366_s1 + $0xb] sm:$0x1] %vm7_vm0, %v137_v17   ;;  %1583 = vst.msk [vmem:[%s4366_s1 + $0x8a] sm:$0x2] %vm7_vm0, %v137_v17   ;;  %v1203_v12 = vld [vmem:[#allocation0] sm:$0xf]  }
  0x92   :  { %1584 = vst.msk [vmem:[%s4366_s1 + $0x109] sm:$0x4] %vm7_vm0, %v137_v17   ;;  %1585 = vst.msk [vmem:[%s4366_s1 + $0x188] sm:$0x8] %vm7_vm0, %v137_v17   ;;  %832 = vrot.lane.b32.xlu0 %v831_v15, %s2245_s21  ;;  %s2255_s21 = smov 49  }
  0x93   :  { %1586 = vst.msk [vmem:[%s4366_s1 + $0xc] sm:$0x1] %vm7_vm0, %v149_v18   ;;  %1587 = vst.msk [vmem:[%s4366_s1 + $0x8b] sm:$0x2] %vm7_vm0, %v149_v18   ;;  %844 = vrot.lane.b32.xlu1 %v843_v16, %s2246_s22  ;;  %s2256_s22 = smov 48  }
  0x94   :  { %1588 = vst.msk [vmem:[%s4366_s1 + $0x10a] sm:$0x4] %vm7_vm0, %v149_v18   ;;  %1589 = vst.msk [vmem:[%s4366_s1 + $0x189] sm:$0x8] %vm7_vm0, %v149_v18   ;;  %v161_v21 = vpop.permute.xlu0 %160   ;;  %v1215_v15 = vld [vmem:[#allocation0] sm:$0xf]  }
  0x95   :  { %v173_v22 = vpop.permute.xlu1 %172   ;;  %1590 = vst.msk [vmem:[%s4366_s1 + $0xd] sm:$0x1] %vm7_vm0, %v161_v21   ;;  %1591 = vst.msk [vmem:[%s4366_s1 + $0x8c] sm:$0x2] %vm7_vm0, %v161_v21   ;;  %v1227_v16 = vld [vmem:[#allocation0] sm:$0xf]  }
  0x96   :  { %1592 = vst.msk [vmem:[%s4366_s1 + $0x10b] sm:$0x4] %vm7_vm0, %v161_v21   ;;  %1593 = vst.msk [vmem:[%s4366_s1 + $0x18a] sm:$0x8] %vm7_vm0, %v161_v21   ;;  %856 = vrot.lane.b32.xlu0 %v855_v19, %s2247_s9  ;;  %s2257_s9 = smov 47  }
  0x97   :  { %1594 = vst.msk [vmem:[%s4366_s1 + $0xe] sm:$0x1] %vm7_vm0, %v173_v22   ;;  %1595 = vst.msk [vmem:[%s4366_s1 + $0x8d] sm:$0x2] %vm7_vm0, %v173_v22   ;;  %868 = vrot.lane.b32.xlu1 %v867_v20, %s2248_s10  ;;  %s2258_s10 = smov 46  }
  0x98   :  { %1596 = vst.msk [vmem:[%s4366_s1 + $0x10c] sm:$0x4] %vm7_vm0, %v173_v22   ;;  %1597 = vst.msk [vmem:[%s4366_s1 + $0x18b] sm:$0x8] %vm7_vm0, %v173_v22   ;;  %v185_v25 = vpop.permute.xlu0 %184   ;;  %v1239_v19 = vld [vmem:[#allocation0] sm:$0xf]  }
  0x99   :  { %v197_v26 = vpop.permute.xlu1 %196   ;;  %1598 = vst.msk [vmem:[%s4366_s1 + $0xf] sm:$0x1] %vm7_vm0, %v185_v25   ;;  %1599 = vst.msk [vmem:[%s4366_s1 + $0x8e] sm:$0x2] %vm7_vm0, %v185_v25   ;;  %v1251_v20 = vld [vmem:[#allocation0] sm:$0xf]  }
  0x9a   :  { %1600 = vst.msk [vmem:[%s4366_s1 + $0x10d] sm:$0x4] %vm7_vm0, %v185_v25   ;;  %1601 = vst.msk [vmem:[%s4366_s1 + $0x18c] sm:$0x8] %vm7_vm0, %v185_v25   ;;  %880 = vrot.lane.b32.xlu0 %v879_v23, %s2249_s27  ;;  %s2259_s27 = smov 45  }
  0x9b   :  { %1602 = vst.msk [vmem:[%s4366_s1 + $0x10] sm:$0x1] %vm7_vm0, %v197_v26   ;;  %1603 = vst.msk [vmem:[%s4366_s1 + $0x8f] sm:$0x2] %vm7_vm0, %v197_v26   ;;  %892 = vrot.lane.b32.xlu1 %v891_v24, %s2250_s28  ;;  %s2260_s28 = smov 44  }
  0x9c   :  { %1604 = vst.msk [vmem:[%s4366_s1 + $0x10e] sm:$0x4] %vm7_vm0, %v197_v26   ;;  %1605 = vst.msk [vmem:[%s4366_s1 + $0x18d] sm:$0x8] %vm7_vm0, %v197_v26   ;;  %v209_v29 = vpop.permute.xlu0 %208   ;;  %v1263_v23 = vld [vmem:[#allocation0] sm:$0xf]  }
  0x9d   :  { %v221_v30 = vpop.permute.xlu1 %220   ;;  %1606 = vst.msk [vmem:[%s4366_s1 + $0x11] sm:$0x1] %vm7_vm0, %v209_v29   ;;  %1607 = vst.msk [vmem:[%s4366_s1 + $0x90] sm:$0x2] %vm7_vm0, %v209_v29   ;;  %v1275_v24 = vld [vmem:[#allocation0] sm:$0xf]  }
  0x9e   :  { %1608 = vst.msk [vmem:[%s4366_s1 + $0x10f] sm:$0x4] %vm7_vm0, %v209_v29   ;;  %1609 = vst.msk [vmem:[%s4366_s1 + $0x18e] sm:$0x8] %vm7_vm0, %v209_v29   ;;  %904 = vrot.lane.b32.xlu0 %v903_v27, %s2251_s15  ;;  %s2261_s15 = smov 43  }
  0x9f   :  { %1610 = vst.msk [vmem:[%s4366_s1 + $0x12] sm:$0x1] %vm7_vm0, %v221_v30   ;;  %1611 = vst.msk [vmem:[%s4366_s1 + $0x91] sm:$0x2] %vm7_vm0, %v221_v30   ;;  %916 = vrot.lane.b32.xlu1 %v915_v28, %s2252_s16  ;;  %s2262_s16 = smov 42  }
  0xa0   :  { %1612 = vst.msk [vmem:[%s4366_s1 + $0x110] sm:$0x4] %vm7_vm0, %v221_v30   ;;  %1613 = vst.msk [vmem:[%s4366_s1 + $0x18f] sm:$0x8] %vm7_vm0, %v221_v30   ;;  %v233_v33 = vpop.permute.xlu0 %232   ;;  %v1287_v27 = vld [vmem:[#allocation0] sm:$0xf]  }
  0xa1   :  { %v245_v34 = vpop.permute.xlu1 %244   ;;  %1614 = vst.msk [vmem:[%s4366_s1 + $0x13] sm:$0x1] %vm7_vm0, %v233_v33   ;;  %1615 = vst.msk [vmem:[%s4366_s1 + $0x92] sm:$0x2] %vm7_vm0, %v233_v33   ;;  %v1299_v28 = vld [vmem:[#allocation0] sm:$0xf]  }
  0xa2   :  { %1616 = vst.msk [vmem:[%s4366_s1 + $0x111] sm:$0x4] %vm7_vm0, %v233_v33   ;;  %1617 = vst.msk [vmem:[%s4366_s1 + $0x190] sm:$0x8] %vm7_vm0, %v233_v33   ;;  %928 = vrot.lane.b32.xlu0 %v927_v31, %s2253_s4  ;;  %s2263_s4 = smov 41  }
  0xa3   :  { %1618 = vst.msk [vmem:[%s4366_s1 + $0x14] sm:$0x1] %vm7_vm0, %v245_v34   ;;  %1619 = vst.msk [vmem:[%s4366_s1 + $0x93] sm:$0x2] %vm7_vm0, %v245_v34   ;;  %940 = vrot.lane.b32.xlu1 %v939_v32, %s2254_s5  ;;  %s2264_s5 = smov 40  }
  0xa4   :  { %1620 = vst.msk [vmem:[%s4366_s1 + $0x112] sm:$0x4] %vm7_vm0, %v245_v34   ;;  %1621 = vst.msk [vmem:[%s4366_s1 + $0x191] sm:$0x8] %vm7_vm0, %v245_v34   ;;  %v257_v37 = vpop.permute.xlu0 %256   ;;  %v1311_v31 = vld [vmem:[#allocation0] sm:$0xf]  }
  0xa5   :  { %v269_v38 = vpop.permute.xlu1 %268   ;;  %1622 = vst.msk [vmem:[%s4366_s1 + $0x15] sm:$0x1] %vm7_vm0, %v257_v37   ;;  %1623 = vst.msk [vmem:[%s4366_s1 + $0x94] sm:$0x2] %vm7_vm0, %v257_v37   ;;  %v1323_v32 = vld [vmem:[#allocation0] sm:$0xf]  }
  0xa6   :  { %1624 = vst.msk [vmem:[%s4366_s1 + $0x113] sm:$0x4] %vm7_vm0, %v257_v37   ;;  %1625 = vst.msk [vmem:[%s4366_s1 + $0x192] sm:$0x8] %vm7_vm0, %v257_v37   ;;  %952 = vrot.lane.b32.xlu0 %v951_v35, %s2255_s21  ;;  %s2265_s21 = smov 39  }
  0xa7   :  { %1626 = vst.msk [vmem:[%s4366_s1 + $0x16] sm:$0x1] %vm7_vm0, %v269_v38   ;;  %1627 = vst.msk [vmem:[%s4366_s1 + $0x95] sm:$0x2] %vm7_vm0, %v269_v38   ;;  %964 = vrot.lane.b32.xlu1 %v963_v36, %s2256_s22  ;;  %s2266_s22 = smov 38  }
  0xa8   :  { %1628 = vst.msk [vmem:[%s4366_s1 + $0x114] sm:$0x4] %vm7_vm0, %v269_v38   ;;  %1629 = vst.msk [vmem:[%s4366_s1 + $0x193] sm:$0x8] %vm7_vm0, %v269_v38   ;;  %v281_v41 = vpop.permute.xlu0 %280   ;;  %v1335_v35 = vld [vmem:[#allocation0] sm:$0xf]  }
  0xa9   :  { %v293_v42 = vpop.permute.xlu1 %292   ;;  %1630 = vst.msk [vmem:[%s4366_s1 + $0x17] sm:$0x1] %vm7_vm0, %v281_v41   ;;  %1631 = vst.msk [vmem:[%s4366_s1 + $0x96] sm:$0x2] %vm7_vm0, %v281_v41   ;;  %v1347_v36 = vld [vmem:[#allocation0] sm:$0xf]  }
  0xaa   :  { %1632 = vst.msk [vmem:[%s4366_s1 + $0x115] sm:$0x4] %vm7_vm0, %v281_v41   ;;  %1633 = vst.msk [vmem:[%s4366_s1 + $0x194] sm:$0x8] %vm7_vm0, %v281_v41   ;;  %976 = vrot.lane.b32.xlu0 %v975_v39, %s2257_s9  ;;  %s2267_s9 = smov 37  }
  0xab   :  { %1634 = vst.msk [vmem:[%s4366_s1 + $0x18] sm:$0x1] %vm7_vm0, %v293_v42   ;;  %1635 = vst.msk [vmem:[%s4366_s1 + $0x97] sm:$0x2] %vm7_vm0, %v293_v42   ;;  %988 = vrot.lane.b32.xlu1 %v987_v40, %s2258_s10  ;;  %s2268_s10 = smov 36  }
  0xac   :  { %1636 = vst.msk [vmem:[%s4366_s1 + $0x116] sm:$0x4] %vm7_vm0, %v293_v42   ;;  %1637 = vst.msk [vmem:[%s4366_s1 + $0x195] sm:$0x8] %vm7_vm0, %v293_v42   ;;  %v305_v45 = vpop.permute.xlu0 %304   ;;  %v1359_v39 = vld [vmem:[#allocation0] sm:$0xf]  }
  0xad   :  { %v317_v46 = vpop.permute.xlu1 %316   ;;  %1638 = vst.msk [vmem:[%s4366_s1 + $0x19] sm:$0x1] %vm7_vm0, %v305_v45   ;;  %1639 = vst.msk [vmem:[%s4366_s1 + $0x98] sm:$0x2] %vm7_vm0, %v305_v45   ;;  %v1371_v40 = vld [vmem:[#allocation0] sm:$0xf]  }
  0xae   :  { %1640 = vst.msk [vmem:[%s4366_s1 + $0x117] sm:$0x4] %vm7_vm0, %v305_v45   ;;  %1641 = vst.msk [vmem:[%s4366_s1 + $0x196] sm:$0x8] %vm7_vm0, %v305_v45   ;;  %1000 = vrot.lane.b32.xlu0 %v999_v43, %s2259_s27  ;;  %s2269_s27 = smov 35  }
  0xaf   :  { %1642 = vst.msk [vmem:[%s4366_s1 + $0x1a] sm:$0x1] %vm7_vm0, %v317_v46   ;;  %1643 = vst.msk [vmem:[%s4366_s1 + $0x99] sm:$0x2] %vm7_vm0, %v317_v46   ;;  %1012 = vrot.lane.b32.xlu1 %v1011_v44, %s2260_s28  ;;  %s2270_s28 = smov 34  }
  0xb0   :  { %1644 = vst.msk [vmem:[%s4366_s1 + $0x118] sm:$0x4] %vm7_vm0, %v317_v46   ;;  %1645 = vst.msk [vmem:[%s4366_s1 + $0x197] sm:$0x8] %vm7_vm0, %v317_v46   ;;  %v329_v49 = vpop.permute.xlu0 %328   ;;  %v1383_v43 = vld [vmem:[#allocation0] sm:$0xf]  }
  0xb1   :  { %v341_v50 = vpop.permute.xlu1 %340   ;;  %1646 = vst.msk [vmem:[%s4366_s1 + $0x1b] sm:$0x1] %vm7_vm0, %v329_v49   ;;  %1647 = vst.msk [vmem:[%s4366_s1 + $0x9a] sm:$0x2] %vm7_vm0, %v329_v49   ;;  %v1395_v44 = vld [vmem:[#allocation0] sm:$0xf]  }
  0xb2   :  { %1648 = vst.msk [vmem:[%s4366_s1 + $0x119] sm:$0x4] %vm7_vm0, %v329_v49   ;;  %1649 = vst.msk [vmem:[%s4366_s1 + $0x198] sm:$0x8] %vm7_vm0, %v329_v49   ;;  %1024 = vrot.lane.b32.xlu0 %v1023_v47, %s2261_s15  ;;  %s2271_s15 = smov 33  }
  0xb3   :  { %1650 = vst.msk [vmem:[%s4366_s1 + $0x1c] sm:$0x1] %vm7_vm0, %v341_v50   ;;  %1651 = vst.msk [vmem:[%s4366_s1 + $0x9b] sm:$0x2] %vm7_vm0, %v341_v50   ;;  %1036 = vrot.lane.b32.xlu1 %v1035_v48, %s2262_s16  ;;  %s2272_s16 = smov 32  }
  0xb4   :  { %1652 = vst.msk [vmem:[%s4366_s1 + $0x11a] sm:$0x4] %vm7_vm0, %v341_v50   ;;  %1653 = vst.msk [vmem:[%s4366_s1 + $0x199] sm:$0x8] %vm7_vm0, %v341_v50   ;;  %v353_v53 = vpop.permute.xlu0 %352   ;;  %v1407_v47 = vld [vmem:[#allocation0] sm:$0xf]  }
  0xb5   :  { %v365_v54 = vpop.permute.xlu1 %364   ;;  %1654 = vst.msk [vmem:[%s4366_s1 + $0x1d] sm:$0x1] %vm7_vm0, %v353_v53   ;;  %1655 = vst.msk [vmem:[%s4366_s1 + $0x9c] sm:$0x2] %vm7_vm0, %v353_v53   ;;  %v1419_v48 = vld [vmem:[#allocation0] sm:$0xf]  }
  0xb6   :  { %1656 = vst.msk [vmem:[%s4366_s1 + $0x11b] sm:$0x4] %vm7_vm0, %v353_v53   ;;  %1657 = vst.msk [vmem:[%s4366_s1 + $0x19a] sm:$0x8] %vm7_vm0, %v353_v53   ;;  %1048 = vrot.lane.b32.xlu0 %v1047_v51, %s2263_s4  ;;  %s2273_s4 = smov 31  }
  0xb7   :  { %1658 = vst.msk [vmem:[%s4366_s1 + $0x1e] sm:$0x1] %vm7_vm0, %v365_v54   ;;  %1659 = vst.msk [vmem:[%s4366_s1 + $0x9d] sm:$0x2] %vm7_vm0, %v365_v54   ;;  %1060 = vrot.lane.b32.xlu1 %v1059_v52, %s2264_s5  ;;  %s2274_s5 = smov 30  }
  0xb8   :  { %1660 = vst.msk [vmem:[%s4366_s1 + $0x11c] sm:$0x4] %vm7_vm0, %v365_v54   ;;  %1661 = vst.msk [vmem:[%s4366_s1 + $0x19b] sm:$0x8] %vm7_vm0, %v365_v54   ;;  %v377_v57 = vpop.permute.xlu0 %376   ;;  %v1431_v51 = vld [vmem:[#allocation0] sm:$0xf]  }
  0xb9   :  { %v389_v58 = vpop.permute.xlu1 %388   ;;  %1662 = vst.msk [vmem:[%s4366_s1 + $0x1f] sm:$0x1] %vm7_vm0, %v377_v57   ;;  %1663 = vst.msk [vmem:[%s4366_s1 + $0x9e] sm:$0x2] %vm7_vm0, %v377_v57   ;;  %v1443_v52 = vld [vmem:[#allocation0] sm:$0xf]  }
  0xba   :  { %1664 = vst.msk [vmem:[%s4366_s1 + $0x11d] sm:$0x4] %vm7_vm0, %v377_v57   ;;  %1665 = vst.msk [vmem:[%s4366_s1 + $0x19c] sm:$0x8] %vm7_vm0, %v377_v57   ;;  %1072 = vrot.lane.b32.xlu0 %v1071_v55, %s2265_s21  ;;  %s2275_s21 = smov 29  }
  0xbb   :  { %1666 = vst.msk [vmem:[%s4366_s1 + $0x20] sm:$0x1] %vm7_vm0, %v389_v58   ;;  %1667 = vst.msk [vmem:[%s4366_s1 + $0x9f] sm:$0x2] %vm7_vm0, %v389_v58   ;;  %1084 = vrot.lane.b32.xlu1 %v1083_v56, %s2266_s22  ;;  %s2276_s22 = smov 28  }
  0xbc   :  { %1668 = vst.msk [vmem:[%s4366_s1 + $0x11e] sm:$0x4] %vm7_vm0, %v389_v58   ;;  %1669 = vst.msk [vmem:[%s4366_s1 + $0x19d] sm:$0x8] %vm7_vm0, %v389_v58   ;;  %v401_v61 = vpop.permute.xlu0 %400   ;;  %v1455_v55 = vld [vmem:[#allocation0] sm:$0xf]  }
  0xbd   :  { %v413_v62 = vpop.permute.xlu1 %412   ;;  %1670 = vst.msk [vmem:[%s4366_s1 + $0x21] sm:$0x1] %vm7_vm0, %v401_v61   ;;  %1671 = vst.msk [vmem:[%s4366_s1 + $0xa0] sm:$0x2] %vm7_vm0, %v401_v61   ;;  %v1467_v56 = vld [vmem:[#allocation0] sm:$0xf]  }
  0xbe   :  { %1672 = vst.msk [vmem:[%s4366_s1 + $0x11f] sm:$0x4] %vm7_vm0, %v401_v61   ;;  %1673 = vst.msk [vmem:[%s4366_s1 + $0x19e] sm:$0x8] %vm7_vm0, %v401_v61   ;;  %1096 = vrot.lane.b32.xlu0 %v1095_v59, %s2267_s9  ;;  %s2277_s9 = smov 27  }
  0xbf   :  { %1674 = vst.msk [vmem:[%s4366_s1 + $0x22] sm:$0x1] %vm7_vm0, %v413_v62   ;;  %1675 = vst.msk [vmem:[%s4366_s1 + $0xa1] sm:$0x2] %vm7_vm0, %v413_v62   ;;  %1108 = vrot.lane.b32.xlu1 %v1107_v60, %s2268_s10  ;;  %s2278_s10 = smov 26  }
  0xc0   :  { %1676 = vst.msk [vmem:[%s4366_s1 + $0x120] sm:$0x4] %vm7_vm0, %v413_v62   ;;  %1677 = vst.msk [vmem:[%s4366_s1 + $0x19f] sm:$0x8] %vm7_vm0, %v413_v62   ;;  %v425_v1 = vpop.permute.xlu0 %424   ;;  %v6_v59 = vld [vmem:[#allocation0] sm:$0xf]  }
  0xc1   :  { %v437_v2 = vpop.permute.xlu1 %436   ;;  %1678 = vst.msk [vmem:[%s4366_s1 + $0x23] sm:$0x1] %vm7_vm0, %v425_v1   ;;  %1679 = vst.msk [vmem:[%s4366_s1 + $0xa2] sm:$0x2] %vm7_vm0, %v425_v1   ;;  %v1479_v60 = vld [vmem:[#allocation0] sm:$0xf]  }
  0xc2   :  { %1680 = vst.msk [vmem:[%s4366_s1 + $0x121] sm:$0x4] %vm7_vm0, %v425_v1   ;;  %1681 = vst.msk [vmem:[%s4366_s1 + $0x1a0] sm:$0x8] %vm7_vm0, %v425_v1   ;;  %1120 = vrot.lane.b32.xlu0 %v1119_v63, %s2269_s27  ;;  %s2279_s27 = smov 25  }
  0xc3   :  { %1682 = vst.msk [vmem:[%s4366_s1 + $0x24] sm:$0x1] %vm7_vm0, %v437_v2   ;;  %1683 = vst.msk [vmem:[%s4366_s1 + $0xa3] sm:$0x2] %vm7_vm0, %v437_v2   ;;  %1132 = vrot.lane.b32.xlu1 %v1131_v0, %s2270_s28  ;;  %s2280_s28 = smov 24  }
  0xc4   :  { %1684 = vst.msk [vmem:[%s4366_s1 + $0x122] sm:$0x4] %vm7_vm0, %v437_v2   ;;  %1685 = vst.msk [vmem:[%s4366_s1 + $0x1a1] sm:$0x8] %vm7_vm0, %v437_v2   ;;  %v449_v5 = vpop.permute.xlu0 %448   ;;  %v1491_v61 = vld [vmem:[#allocation0] sm:$0xf]  }
  0xc5   :  { %v461_v6 = vpop.permute.xlu1 %460   ;;  %1686 = vst.msk [vmem:[%s4366_s1 + $0x25] sm:$0x1] %vm7_vm0, %v449_v5   ;;  %1687 = vst.msk [vmem:[%s4366_s1 + $0xa4] sm:$0x2] %vm7_vm0, %v449_v5   ;;  %v1503_v0 = vld [vmem:[#allocation0] sm:$0xf]  }
  0xc6   :  { %1688 = vst.msk [vmem:[%s4366_s1 + $0x123] sm:$0x4] %vm7_vm0, %v449_v5   ;;  %1689 = vst.msk [vmem:[%s4366_s1 + $0x1a2] sm:$0x8] %vm7_vm0, %v449_v5   ;;  %1144 = vrot.lane.b32.xlu0 %v1143_v3, %s2271_s15  ;;  %s2281_s15 = smov 23  }
  0xc7   :  { %1690 = vst.msk [vmem:[%s4366_s1 + $0x26] sm:$0x1] %vm7_vm0, %v461_v6   ;;  %1691 = vst.msk [vmem:[%s4366_s1 + $0xa5] sm:$0x2] %vm7_vm0, %v461_v6   ;;  %1156 = vrot.lane.b32.xlu1 %v1155_v4, %s2272_s16  ;;  %s2282_s16 = smov 22  }
  0xc8   :  { %1692 = vst.msk [vmem:[%s4366_s1 + $0x124] sm:$0x4] %vm7_vm0, %v461_v6   ;;  %1693 = vst.msk [vmem:[%s4366_s1 + $0x1a3] sm:$0x8] %vm7_vm0, %v461_v6   ;;  %v473_v9 = vpop.permute.xlu0 %472   ;;  %v1515_v1 = vld [vmem:[#allocation0] sm:$0xf]  }
  0xc9   :  { %v485_v10 = vpop.permute.xlu1 %484   ;;  %1694 = vst.msk [vmem:[%s4366_s1 + $0x27] sm:$0x1] %vm7_vm0, %v473_v9   ;;  %1695 = vst.msk [vmem:[%s4366_s1 + $0xa6] sm:$0x2] %vm7_vm0, %v473_v9   ;;  %v1527_v4 = vld [vmem:[#allocation0] sm:$0xf]  }
  0xca   :  { %1696 = vst.msk [vmem:[%s4366_s1 + $0x125] sm:$0x4] %vm7_vm0, %v473_v9   ;;  %1697 = vst.msk [vmem:[%s4366_s1 + $0x1a4] sm:$0x8] %vm7_vm0, %v473_v9   ;;  %1168 = vrot.lane.b32.xlu0 %v1167_v7, %s2273_s4  ;;  %s2283_s4 = smov 21  }
  0xcb   :  { %1698 = vst.msk [vmem:[%s4366_s1 + $0x28] sm:$0x1] %vm7_vm0, %v485_v10   ;;  %1699 = vst.msk [vmem:[%s4366_s1 + $0xa7] sm:$0x2] %vm7_vm0, %v485_v10   ;;  %1180 = vrot.lane.b32.xlu1 %v1179_v8, %s2274_s5  ;;  %s2284_s5 = smov 20  }
  0xcc   :  { %1700 = vst.msk [vmem:[%s4366_s1 + $0x126] sm:$0x4] %vm7_vm0, %v485_v10   ;;  %1701 = vst.msk [vmem:[%s4366_s1 + $0x1a5] sm:$0x8] %vm7_vm0, %v485_v10   ;;  %v497_v13 = vpop.permute.xlu0 %496  }
  0xcd   :  { %v509_v14 = vpop.permute.xlu1 %508   ;;  %1702 = vst.msk [vmem:[%s4366_s1 + $0x29] sm:$0x1] %vm7_vm0, %v497_v13   ;;  %1703 = vst.msk [vmem:[%s4366_s1 + $0xa8] sm:$0x2] %vm7_vm0, %v497_v13  }
  0xce   :  { %1704 = vst.msk [vmem:[%s4366_s1 + $0x127] sm:$0x4] %vm7_vm0, %v497_v13   ;;  %1705 = vst.msk [vmem:[%s4366_s1 + $0x1a6] sm:$0x8] %vm7_vm0, %v497_v13   ;;  %1192 = vrot.lane.b32.xlu0 %v1191_v11, %s2275_s21  ;;  %s2285_s21 = smov 19  }
  0xcf   :  { %1706 = vst.msk [vmem:[%s4366_s1 + $0x2a] sm:$0x1] %vm7_vm0, %v509_v14   ;;  %1707 = vst.msk [vmem:[%s4366_s1 + $0xa9] sm:$0x2] %vm7_vm0, %v509_v14   ;;  %1204 = vrot.lane.b32.xlu1 %v1203_v12, %s2276_s22  ;;  %s2286_s22 = smov 18  }
  0xd0   :  { %1708 = vst.msk [vmem:[%s4366_s1 + $0x128] sm:$0x4] %vm7_vm0, %v509_v14   ;;  %1709 = vst.msk [vmem:[%s4366_s1 + $0x1a7] sm:$0x8] %vm7_vm0, %v509_v14   ;;  %v521_v17 = vpop.permute.xlu0 %520  }
  0xd1   :  { %v533_v18 = vpop.permute.xlu1 %532   ;;  %1710 = vst.msk [vmem:[%s4366_s1 + $0x2b] sm:$0x1] %vm7_vm0, %v521_v17   ;;  %1711 = vst.msk [vmem:[%s4366_s1 + $0xaa] sm:$0x2] %vm7_vm0, %v521_v17  }
  0xd2   :  { %1712 = vst.msk [vmem:[%s4366_s1 + $0x129] sm:$0x4] %vm7_vm0, %v521_v17   ;;  %1713 = vst.msk [vmem:[%s4366_s1 + $0x1a8] sm:$0x8] %vm7_vm0, %v521_v17   ;;  %1216 = vrot.lane.b32.xlu0 %v1215_v15, %s2277_s9  ;;  %s2287_s9 = smov 17  }
  0xd3   :  { %1714 = vst.msk [vmem:[%s4366_s1 + $0x2c] sm:$0x1] %vm7_vm0, %v533_v18   ;;  %1715 = vst.msk [vmem:[%s4366_s1 + $0xab] sm:$0x2] %vm7_vm0, %v533_v18   ;;  %1228 = vrot.lane.b32.xlu1 %v1227_v16, %s2278_s10  ;;  %s2288_s10 = smov 16  }
  0xd4   :  { %1716 = vst.msk [vmem:[%s4366_s1 + $0x12a] sm:$0x4] %vm7_vm0, %v533_v18   ;;  %1717 = vst.msk [vmem:[%s4366_s1 + $0x1a9] sm:$0x8] %vm7_vm0, %v533_v18   ;;  %v545_v21 = vpop.permute.xlu0 %544  }
  0xd5   :  { %v557_v22 = vpop.permute.xlu1 %556   ;;  %1718 = vst.msk [vmem:[%s4366_s1 + $0x2d] sm:$0x1] %vm7_vm0, %v545_v21   ;;  %1719 = vst.msk [vmem:[%s4366_s1 + $0xac] sm:$0x2] %vm7_vm0, %v545_v21  }
  0xd6   :  { %1720 = vst.msk [vmem:[%s4366_s1 + $0x12b] sm:$0x4] %vm7_vm0, %v545_v21   ;;  %1721 = vst.msk [vmem:[%s4366_s1 + $0x1aa] sm:$0x8] %vm7_vm0, %v545_v21   ;;  %1240 = vrot.lane.b32.xlu0 %v1239_v19, %s2279_s27  ;;  %s2289_s27 = smov 15  }
  0xd7   :  { %1722 = vst.msk [vmem:[%s4366_s1 + $0x2e] sm:$0x1] %vm7_vm0, %v557_v22   ;;  %1723 = vst.msk [vmem:[%s4366_s1 + $0xad] sm:$0x2] %vm7_vm0, %v557_v22   ;;  %1252 = vrot.lane.b32.xlu1 %v1251_v20, %s2280_s28  ;;  %s2290_s28 = smov 14  }
  0xd8   :  { %1724 = vst.msk [vmem:[%s4366_s1 + $0x12c] sm:$0x4] %vm7_vm0, %v557_v22   ;;  %1725 = vst.msk [vmem:[%s4366_s1 + $0x1ab] sm:$0x8] %vm7_vm0, %v557_v22   ;;  %v569_v25 = vpop.permute.xlu0 %568  }
  0xd9   :  { %v581_v26 = vpop.permute.xlu1 %580   ;;  %1726 = vst.msk [vmem:[%s4366_s1 + $0x2f] sm:$0x1] %vm7_vm0, %v569_v25   ;;  %1727 = vst.msk [vmem:[%s4366_s1 + $0xae] sm:$0x2] %vm7_vm0, %v569_v25  }
  0xda   :  { %1728 = vst.msk [vmem:[%s4366_s1 + $0x12d] sm:$0x4] %vm7_vm0, %v569_v25   ;;  %1729 = vst.msk [vmem:[%s4366_s1 + $0x1ac] sm:$0x8] %vm7_vm0, %v569_v25   ;;  %1264 = vrot.lane.b32.xlu0 %v1263_v23, %s2281_s15  ;;  %s2291_s15 = smov 13  }
  0xdb   :  { %1730 = vst.msk [vmem:[%s4366_s1 + $0x30] sm:$0x1] %vm7_vm0, %v581_v26   ;;  %1731 = vst.msk [vmem:[%s4366_s1 + $0xaf] sm:$0x2] %vm7_vm0, %v581_v26   ;;  %1276 = vrot.lane.b32.xlu1 %v1275_v24, %s2282_s16  ;;  %s2292_s16 = smov 12  }
  0xdc   :  { %1732 = vst.msk [vmem:[%s4366_s1 + $0x12e] sm:$0x4] %vm7_vm0, %v581_v26   ;;  %1733 = vst.msk [vmem:[%s4366_s1 + $0x1ad] sm:$0x8] %vm7_vm0, %v581_v26   ;;  %v593_v29 = vpop.permute.xlu0 %592  }
  0xdd   :  { %v605_v30 = vpop.permute.xlu1 %604   ;;  %1734 = vst.msk [vmem:[%s4366_s1 + $0x31] sm:$0x1] %vm7_vm0, %v593_v29   ;;  %1735 = vst.msk [vmem:[%s4366_s1 + $0xb0] sm:$0x2] %vm7_vm0, %v593_v29  }
  0xde   :  { %1736 = vst.msk [vmem:[%s4366_s1 + $0x12f] sm:$0x4] %vm7_vm0, %v593_v29   ;;  %1737 = vst.msk [vmem:[%s4366_s1 + $0x1ae] sm:$0x8] %vm7_vm0, %v593_v29   ;;  %1288 = vrot.lane.b32.xlu0 %v1287_v27, %s2283_s4  ;;  %s2293_s4 = smov 11  }
  0xdf   :  { %1738 = vst.msk [vmem:[%s4366_s1 + $0x32] sm:$0x1] %vm7_vm0, %v605_v30   ;;  %1739 = vst.msk [vmem:[%s4366_s1 + $0xb1] sm:$0x2] %vm7_vm0, %v605_v30   ;;  %1300 = vrot.lane.b32.xlu1 %v1299_v28, %s2284_s5  ;;  %s2294_s5 = smov 10  }
  0xe0   :  { %1740 = vst.msk [vmem:[%s4366_s1 + $0x130] sm:$0x4] %vm7_vm0, %v605_v30   ;;  %1741 = vst.msk [vmem:[%s4366_s1 + $0x1af] sm:$0x8] %vm7_vm0, %v605_v30   ;;  %v617_v33 = vpop.permute.xlu0 %616  }
  0xe1   :  { %v629_v34 = vpop.permute.xlu1 %628   ;;  %1742 = vst.msk [vmem:[%s4366_s1 + $0x33] sm:$0x1] %vm7_vm0, %v617_v33   ;;  %1743 = vst.msk [vmem:[%s4366_s1 + $0xb2] sm:$0x2] %vm7_vm0, %v617_v33  }
  0xe2   :  { %1744 = vst.msk [vmem:[%s4366_s1 + $0x131] sm:$0x4] %vm7_vm0, %v617_v33   ;;  %1745 = vst.msk [vmem:[%s4366_s1 + $0x1b0] sm:$0x8] %vm7_vm0, %v617_v33   ;;  %1312 = vrot.lane.b32.xlu0 %v1311_v31, %s2285_s21  ;;  %s2295_s21 = smov 9  }
  0xe3   :  { %1746 = vst.msk [vmem:[%s4366_s1 + $0x34] sm:$0x1] %vm7_vm0, %v629_v34   ;;  %1747 = vst.msk [vmem:[%s4366_s1 + $0xb3] sm:$0x2] %vm7_vm0, %v629_v34   ;;  %1324 = vrot.lane.b32.xlu1 %v1323_v32, %s2286_s22  ;;  %s2296_s22 = smov 8  }
  0xe4   :  { %1748 = vst.msk [vmem:[%s4366_s1 + $0x132] sm:$0x4] %vm7_vm0, %v629_v34   ;;  %1749 = vst.msk [vmem:[%s4366_s1 + $0x1b1] sm:$0x8] %vm7_vm0, %v629_v34   ;;  %v641_v37 = vpop.permute.xlu0 %640  }
  0xe5   :  { %v653_v38 = vpop.permute.xlu1 %652   ;;  %1750 = vst.msk [vmem:[%s4366_s1 + $0x35] sm:$0x1] %vm7_vm0, %v641_v37   ;;  %1751 = vst.msk [vmem:[%s4366_s1 + $0xb4] sm:$0x2] %vm7_vm0, %v641_v37  }
  0xe6   :  { %1752 = vst.msk [vmem:[%s4366_s1 + $0x133] sm:$0x4] %vm7_vm0, %v641_v37   ;;  %1753 = vst.msk [vmem:[%s4366_s1 + $0x1b2] sm:$0x8] %vm7_vm0, %v641_v37   ;;  %1336 = vrot.lane.b32.xlu0 %v1335_v35, %s2287_s9 }
  0xe7   :  { %1754 = vst.msk [vmem:[%s4366_s1 + $0x36] sm:$0x1] %vm7_vm0, %v653_v38   ;;  %1755 = vst.msk [vmem:[%s4366_s1 + $0xb5] sm:$0x2] %vm7_vm0, %v653_v38   ;;  %1348 = vrot.lane.b32.xlu1 %v1347_v36, %s2288_s10 }
  0xe8   :  { %1756 = vst.msk [vmem:[%s4366_s1 + $0x134] sm:$0x4] %vm7_vm0, %v653_v38   ;;  %1757 = vst.msk [vmem:[%s4366_s1 + $0x1b3] sm:$0x8] %vm7_vm0, %v653_v38   ;;  %v665_v41 = vpop.permute.xlu0 %664  }
  0xe9   :  { %v677_v42 = vpop.permute.xlu1 %676   ;;  %1758 = vst.msk [vmem:[%s4366_s1 + $0x37] sm:$0x1] %vm7_vm0, %v665_v41   ;;  %1759 = vst.msk [vmem:[%s4366_s1 + $0xb6] sm:$0x2] %vm7_vm0, %v665_v41  }
  0xea   :  { %1760 = vst.msk [vmem:[%s4366_s1 + $0x135] sm:$0x4] %vm7_vm0, %v665_v41   ;;  %1761 = vst.msk [vmem:[%s4366_s1 + $0x1b4] sm:$0x8] %vm7_vm0, %v665_v41   ;;  %1360 = vrot.lane.b32.xlu0 %v1359_v39, %s2289_s27 }
  0xeb   :  { %1762 = vst.msk [vmem:[%s4366_s1 + $0x38] sm:$0x1] %vm7_vm0, %v677_v42   ;;  %1763 = vst.msk [vmem:[%s4366_s1 + $0xb7] sm:$0x2] %vm7_vm0, %v677_v42   ;;  %1372 = vrot.lane.b32.xlu1 %v1371_v40, %s2290_s28 }
  0xec   :  { %1764 = vst.msk [vmem:[%s4366_s1 + $0x136] sm:$0x4] %vm7_vm0, %v677_v42   ;;  %1765 = vst.msk [vmem:[%s4366_s1 + $0x1b5] sm:$0x8] %vm7_vm0, %v677_v42   ;;  %v689_v45 = vpop.permute.xlu0 %688  }
  0xed   :  { %v701_v46 = vpop.permute.xlu1 %700   ;;  %1766 = vst.msk [vmem:[%s4366_s1 + $0x39] sm:$0x1] %vm7_vm0, %v689_v45   ;;  %1767 = vst.msk [vmem:[%s4366_s1 + $0xb8] sm:$0x2] %vm7_vm0, %v689_v45  }
  0xee   :  { %1768 = vst.msk [vmem:[%s4366_s1 + $0x137] sm:$0x4] %vm7_vm0, %v689_v45   ;;  %1769 = vst.msk [vmem:[%s4366_s1 + $0x1b6] sm:$0x8] %vm7_vm0, %v689_v45   ;;  %1384 = vrot.lane.b32.xlu0 %v1383_v43, %s2291_s15 }
  0xef   :  { %1770 = vst.msk [vmem:[%s4366_s1 + $0x3a] sm:$0x1] %vm7_vm0, %v701_v46   ;;  %1771 = vst.msk [vmem:[%s4366_s1 + $0xb9] sm:$0x2] %vm7_vm0, %v701_v46   ;;  %1396 = vrot.lane.b32.xlu1 %v1395_v44, %s2292_s16 }
  0xf0   :  { %1772 = vst.msk [vmem:[%s4366_s1 + $0x138] sm:$0x4] %vm7_vm0, %v701_v46   ;;  %1773 = vst.msk [vmem:[%s4366_s1 + $0x1b7] sm:$0x8] %vm7_vm0, %v701_v46   ;;  %v713_v49 = vpop.permute.xlu0 %712  }
  0xf1   :  { %v725_v50 = vpop.permute.xlu1 %724   ;;  %1774 = vst.msk [vmem:[%s4366_s1 + $0x3b] sm:$0x1] %vm7_vm0, %v713_v49   ;;  %1775 = vst.msk [vmem:[%s4366_s1 + $0xba] sm:$0x2] %vm7_vm0, %v713_v49  }
  0xf2   :  { %1776 = vst.msk [vmem:[%s4366_s1 + $0x139] sm:$0x4] %vm7_vm0, %v713_v49   ;;  %1777 = vst.msk [vmem:[%s4366_s1 + $0x1b8] sm:$0x8] %vm7_vm0, %v713_v49   ;;  %1408 = vrot.lane.b32.xlu0 %v1407_v47, %s2293_s4 }
  0xf3   :  { %1778 = vst.msk [vmem:[%s4366_s1 + $0x3c] sm:$0x1] %vm7_vm0, %v725_v50   ;;  %1779 = vst.msk [vmem:[%s4366_s1 + $0xbb] sm:$0x2] %vm7_vm0, %v725_v50   ;;  %1420 = vrot.lane.b32.xlu1 %v1419_v48, %s2294_s5 }
  0xf4   :  { %1780 = vst.msk [vmem:[%s4366_s1 + $0x13a] sm:$0x4] %vm7_vm0, %v725_v50   ;;  %1781 = vst.msk [vmem:[%s4366_s1 + $0x1b9] sm:$0x8] %vm7_vm0, %v725_v50   ;;  %v737_v53 = vpop.permute.xlu0 %736  }
  0xf5   :  { %v749_v54 = vpop.permute.xlu1 %748   ;;  %1782 = vst.msk [vmem:[%s4366_s1 + $0x3d] sm:$0x1] %vm7_vm0, %v737_v53   ;;  %1783 = vst.msk [vmem:[%s4366_s1 + $0xbc] sm:$0x2] %vm7_vm0, %v737_v53  }
  0xf6   :  { %1784 = vst.msk [vmem:[%s4366_s1 + $0x13b] sm:$0x4] %vm7_vm0, %v737_v53   ;;  %1785 = vst.msk [vmem:[%s4366_s1 + $0x1ba] sm:$0x8] %vm7_vm0, %v737_v53   ;;  %1432 = vrot.lane.b32.xlu0 %v1431_v51, %s2295_s21 }
  0xf7   :  { %1786 = vst.msk [vmem:[%s4366_s1 + $0x3e] sm:$0x1] %vm7_vm0, %v749_v54   ;;  %1787 = vst.msk [vmem:[%s4366_s1 + $0xbd] sm:$0x2] %vm7_vm0, %v749_v54   ;;  %1444 = vrot.lane.b32.xlu1 %v1443_v52, %s2296_s22 }
  0xf8   :  { %1788 = vst.msk [vmem:[%s4366_s1 + $0x13c] sm:$0x4] %vm7_vm0, %v749_v54   ;;  %1789 = vst.msk [vmem:[%s4366_s1 + $0x1bb] sm:$0x8] %vm7_vm0, %v749_v54   ;;  %v761_v57 = vpop.permute.xlu0 %760  }
  0xf9   :  { %v773_v58 = vpop.permute.xlu1 %772   ;;  %1790 = vst.msk [vmem:[%s4366_s1 + $0x3f] sm:$0x1] %vm7_vm0, %v761_v57   ;;  %1791 = vst.msk [vmem:[%s4366_s1 + $0xbe] sm:$0x2] %vm7_vm0, %v761_v57  }
  0xfa   :  { %1792 = vst.msk [vmem:[%s4366_s1 + $0x13d] sm:$0x4] %vm7_vm0, %v761_v57   ;;  %1793 = vst.msk [vmem:[%s4366_s1 + $0x1bc] sm:$0x8] %vm7_vm0, %v761_v57   ;;  %1456 = vrot.lane.b32.xlu0 %v1455_v55, %s2297_s17 }
  0xfb   :  { %1794 = vst.msk [vmem:[%s4366_s1 + $0x40] sm:$0x1] %vm7_vm0, %v773_v58   ;;  %1795 = vst.msk [vmem:[%s4366_s1 + $0xbf] sm:$0x2] %vm7_vm0, %v773_v58   ;;  %1468 = vrot.lane.b32.xlu1 %v1467_v56, %s2298_s18 }
  0xfc   :  { %1796 = vst.msk [vmem:[%s4366_s1 + $0x13e] sm:$0x4] %vm7_vm0, %v773_v58   ;;  %1797 = vst.msk [vmem:[%s4366_s1 + $0x1bd] sm:$0x8] %vm7_vm0, %v773_v58   ;;  %v785_v62 = vpop.permute.xlu0 %784  }
  0xfd   :  { %8 = vst.msk [vmem:[%s4366_s1] sm:$0x1] %vm7_vm0, %v6_v59   ;;  %1539 = vst.msk [vmem:[%s4366_s1 + $0x7f] sm:$0x2] %vm7_vm0, %v6_v59   ;;  %v797_v63 = vpop.permute.xlu1 %796  }
  0xfe   :  { %1540 = vst.msk [vmem:[%s4366_s1 + $0xfe] sm:$0x4] %vm7_vm0, %v6_v59   ;;  %1541 = vst.msk [vmem:[%s4366_s1 + $0x17d] sm:$0x8] %vm7_vm0, %v6_v59   ;;  %1480 = vrot.lane.b32.xlu0 %v1479_v60, %s2299_s6 }
  0xff   :  { %1798 = vst.msk [vmem:[%s4366_s1 + $0x41] sm:$0x1] %vm7_vm0, %v785_v62   ;;  %1799 = vst.msk [vmem:[%s4366_s1 + $0xc0] sm:$0x2] %vm7_vm0, %v785_v62   ;;  %1492 = vrot.lane.b32.xlu1 %v1491_v61, %s2300_s7 }
 0x100   :  { %1800 = vst.msk [vmem:[%s4366_s1 + $0x13f] sm:$0x4] %vm7_vm0, %v785_v62   ;;  %1801 = vst.msk [vmem:[%s4366_s1 + $0x1be] sm:$0x8] %vm7_vm0, %v785_v62   ;;  %v809_v2 = vpop.permute.xlu0 %808  }
 0x101   :  { %1802 = vst.msk [vmem:[%s4366_s1 + $0x42] sm:$0x1] %vm7_vm0, %v797_v63   ;;  %1803 = vst.msk [vmem:[%s4366_s1 + $0xc1] sm:$0x2] %vm7_vm0, %v797_v63   ;;  %v821_v3 = vpop.permute.xlu1 %820  }
 0x102   :  { %1804 = vst.msk [vmem:[%s4366_s1 + $0x140] sm:$0x4] %vm7_vm0, %v797_v63   ;;  %1805 = vst.msk [vmem:[%s4366_s1 + $0x1bf] sm:$0x8] %vm7_vm0, %v797_v63   ;;  %1504 = vrot.lane.b32.xlu0 %v1503_v0, %s2301_s23 }
 0x103   :  { %1806 = vst.msk [vmem:[%s4366_s1 + $0x43] sm:$0x1] %vm7_vm0, %v809_v2   ;;  %1807 = vst.msk [vmem:[%s4366_s1 + $0xc2] sm:$0x2] %vm7_vm0, %v809_v2   ;;  %1516 = vrot.lane.b32.xlu1 %v1515_v1, %s2302_s24 }
 0x104   :  { %1808 = vst.msk [vmem:[%s4366_s1 + $0x141] sm:$0x4] %vm7_vm0, %v809_v2   ;;  %1809 = vst.msk [vmem:[%s4366_s1 + $0x1c0] sm:$0x8] %vm7_vm0, %v809_v2   ;;  %v833_v5 = vpop.permute.xlu0 %832  }
 0x105   :  { %1810 = vst.msk [vmem:[%s4366_s1 + $0x44] sm:$0x1] %vm7_vm0, %v821_v3   ;;  %1811 = vst.msk [vmem:[%s4366_s1 + $0xc3] sm:$0x2] %vm7_vm0, %v821_v3   ;;  %v845_v6 = vpop.permute.xlu1 %844  }
 0x106   :  { %1812 = vst.msk [vmem:[%s4366_s1 + $0x142] sm:$0x4] %vm7_vm0, %v821_v3   ;;  %1813 = vst.msk [vmem:[%s4366_s1 + $0x1c1] sm:$0x8] %vm7_vm0, %v821_v3   ;;  %1528 = vrot.lane.b32.xlu0 %v1527_v4, %s2303_s11 }
 0x107   :  { %1814 = vst.msk [vmem:[%s4366_s1 + $0x45] sm:$0x1] %vm7_vm0, %v833_v5   ;;  %1815 = vst.msk [vmem:[%s4366_s1 + $0xc4] sm:$0x2] %vm7_vm0, %v833_v5  }
 0x108   :  { %1816 = vst.msk [vmem:[%s4366_s1 + $0x143] sm:$0x4] %vm7_vm0, %v833_v5   ;;  %1817 = vst.msk [vmem:[%s4366_s1 + $0x1c2] sm:$0x8] %vm7_vm0, %v833_v5   ;;  %v857_v7 = vpop.permute.xlu0 %856  }
 0x109   :  { %1818 = vst.msk [vmem:[%s4366_s1 + $0x46] sm:$0x1] %vm7_vm0, %v845_v6   ;;  %1819 = vst.msk [vmem:[%s4366_s1 + $0xc5] sm:$0x2] %vm7_vm0, %v845_v6   ;;  %v869_v8 = vpop.permute.xlu1 %868  }
 0x10a   :  { %1820 = vst.msk [vmem:[%s4366_s1 + $0x144] sm:$0x4] %vm7_vm0, %v845_v6   ;;  %1821 = vst.msk [vmem:[%s4366_s1 + $0x1c3] sm:$0x8] %vm7_vm0, %v845_v6  }
 0x10b   :  { %1822 = vst.msk [vmem:[%s4366_s1 + $0x47] sm:$0x1] %vm7_vm0, %v857_v7   ;;  %1823 = vst.msk [vmem:[%s4366_s1 + $0xc6] sm:$0x2] %vm7_vm0, %v857_v7  }
 0x10c   :  { %1824 = vst.msk [vmem:[%s4366_s1 + $0x145] sm:$0x4] %vm7_vm0, %v857_v7   ;;  %1825 = vst.msk [vmem:[%s4366_s1 + $0x1c4] sm:$0x8] %vm7_vm0, %v857_v7   ;;  %v881_v9 = vpop.permute.xlu0 %880  }
 0x10d   :  { %1826 = vst.msk [vmem:[%s4366_s1 + $0x48] sm:$0x1] %vm7_vm0, %v869_v8   ;;  %1827 = vst.msk [vmem:[%s4366_s1 + $0xc7] sm:$0x2] %vm7_vm0, %v869_v8   ;;  %v893_v10 = vpop.permute.xlu1 %892  }
 0x10e   :  { %1828 = vst.msk [vmem:[%s4366_s1 + $0x146] sm:$0x4] %vm7_vm0, %v869_v8   ;;  %1829 = vst.msk [vmem:[%s4366_s1 + $0x1c5] sm:$0x8] %vm7_vm0, %v869_v8  }
 0x10f   :  { %1830 = vst.msk [vmem:[%s4366_s1 + $0x49] sm:$0x1] %vm7_vm0, %v881_v9   ;;  %1831 = vst.msk [vmem:[%s4366_s1 + $0xc8] sm:$0x2] %vm7_vm0, %v881_v9  }
 0x110   :  { %1832 = vst.msk [vmem:[%s4366_s1 + $0x147] sm:$0x4] %vm7_vm0, %v881_v9   ;;  %1833 = vst.msk [vmem:[%s4366_s1 + $0x1c6] sm:$0x8] %vm7_vm0, %v881_v9   ;;  %v905_v11 = vpop.permute.xlu0 %904  }
 0x111   :  { %1834 = vst.msk [vmem:[%s4366_s1 + $0x4a] sm:$0x1] %vm7_vm0, %v893_v10   ;;  %1835 = vst.msk [vmem:[%s4366_s1 + $0xc9] sm:$0x2] %vm7_vm0, %v893_v10   ;;  %v917_v12 = vpop.permute.xlu1 %916  }
 0x112   :  { %1836 = vst.msk [vmem:[%s4366_s1 + $0x148] sm:$0x4] %vm7_vm0, %v893_v10   ;;  %1837 = vst.msk [vmem:[%s4366_s1 + $0x1c7] sm:$0x8] %vm7_vm0, %v893_v10  }
 0x113   :  { %1838 = vst.msk [vmem:[%s4366_s1 + $0x4b] sm:$0x1] %vm7_vm0, %v905_v11   ;;  %1839 = vst.msk [vmem:[%s4366_s1 + $0xca] sm:$0x2] %vm7_vm0, %v905_v11  }
 0x114   :  { %1840 = vst.msk [vmem:[%s4366_s1 + $0x149] sm:$0x4] %vm7_vm0, %v905_v11   ;;  %1841 = vst.msk [vmem:[%s4366_s1 + $0x1c8] sm:$0x8] %vm7_vm0, %v905_v11   ;;  %v929_v13 = vpop.permute.xlu0 %928  }
 0x115   :  { %1842 = vst.msk [vmem:[%s4366_s1 + $0x4c] sm:$0x1] %vm7_vm0, %v917_v12   ;;  %1843 = vst.msk [vmem:[%s4366_s1 + $0xcb] sm:$0x2] %vm7_vm0, %v917_v12   ;;  %v941_v14 = vpop.permute.xlu1 %940  }
 0x116   :  { %1844 = vst.msk [vmem:[%s4366_s1 + $0x14a] sm:$0x4] %vm7_vm0, %v917_v12   ;;  %1845 = vst.msk [vmem:[%s4366_s1 + $0x1c9] sm:$0x8] %vm7_vm0, %v917_v12  }
 0x117   :  { %1846 = vst.msk [vmem:[%s4366_s1 + $0x4d] sm:$0x1] %vm7_vm0, %v929_v13   ;;  %1847 = vst.msk [vmem:[%s4366_s1 + $0xcc] sm:$0x2] %vm7_vm0, %v929_v13  }
 0x118   :  { %1848 = vst.msk [vmem:[%s4366_s1 + $0x14b] sm:$0x4] %vm7_vm0, %v929_v13   ;;  %1849 = vst.msk [vmem:[%s4366_s1 + $0x1ca] sm:$0x8] %vm7_vm0, %v929_v13   ;;  %v953_v15 = vpop.permute.xlu0 %952  }
 0x119   :  { %1850 = vst.msk [vmem:[%s4366_s1 + $0x4e] sm:$0x1] %vm7_vm0, %v941_v14   ;;  %1851 = vst.msk [vmem:[%s4366_s1 + $0xcd] sm:$0x2] %vm7_vm0, %v941_v14   ;;  %v965_v16 = vpop.permute.xlu1 %964  }
 0x11a   :  { %1852 = vst.msk [vmem:[%s4366_s1 + $0x14c] sm:$0x4] %vm7_vm0, %v941_v14   ;;  %1853 = vst.msk [vmem:[%s4366_s1 + $0x1cb] sm:$0x8] %vm7_vm0, %v941_v14  }
 0x11b   :  { %1854 = vst.msk [vmem:[%s4366_s1 + $0x4f] sm:$0x1] %vm7_vm0, %v953_v15   ;;  %1855 = vst.msk [vmem:[%s4366_s1 + $0xce] sm:$0x2] %vm7_vm0, %v953_v15  }
 0x11c   :  { %1856 = vst.msk [vmem:[%s4366_s1 + $0x14d] sm:$0x4] %vm7_vm0, %v953_v15   ;;  %1857 = vst.msk [vmem:[%s4366_s1 + $0x1cc] sm:$0x8] %vm7_vm0, %v953_v15   ;;  %v977_v17 = vpop.permute.xlu0 %976  }
 0x11d   :  { %1858 = vst.msk [vmem:[%s4366_s1 + $0x50] sm:$0x1] %vm7_vm0, %v965_v16   ;;  %1859 = vst.msk [vmem:[%s4366_s1 + $0xcf] sm:$0x2] %vm7_vm0, %v965_v16   ;;  %v989_v18 = vpop.permute.xlu1 %988  }
 0x11e   :  { %1860 = vst.msk [vmem:[%s4366_s1 + $0x14e] sm:$0x4] %vm7_vm0, %v965_v16   ;;  %1861 = vst.msk [vmem:[%s4366_s1 + $0x1cd] sm:$0x8] %vm7_vm0, %v965_v16  }
 0x11f   :  { %1862 = vst.msk [vmem:[%s4366_s1 + $0x51] sm:$0x1] %vm7_vm0, %v977_v17   ;;  %1863 = vst.msk [vmem:[%s4366_s1 + $0xd0] sm:$0x2] %vm7_vm0, %v977_v17  }
 0x120   :  { %1864 = vst.msk [vmem:[%s4366_s1 + $0x14f] sm:$0x4] %vm7_vm0, %v977_v17   ;;  %1865 = vst.msk [vmem:[%s4366_s1 + $0x1ce] sm:$0x8] %vm7_vm0, %v977_v17   ;;  %v1001_v19 = vpop.permute.xlu0 %1000  }
 0x121   :  { %1866 = vst.msk [vmem:[%s4366_s1 + $0x52] sm:$0x1] %vm7_vm0, %v989_v18   ;;  %1867 = vst.msk [vmem:[%s4366_s1 + $0xd1] sm:$0x2] %vm7_vm0, %v989_v18   ;;  %v1013_v20 = vpop.permute.xlu1 %1012  }
 0x122   :  { %1868 = vst.msk [vmem:[%s4366_s1 + $0x150] sm:$0x4] %vm7_vm0, %v989_v18   ;;  %1869 = vst.msk [vmem:[%s4366_s1 + $0x1cf] sm:$0x8] %vm7_vm0, %v989_v18  }
 0x123   :  { %1870 = vst.msk [vmem:[%s4366_s1 + $0x53] sm:$0x1] %vm7_vm0, %v1001_v19   ;;  %1871 = vst.msk [vmem:[%s4366_s1 + $0xd2] sm:$0x2] %vm7_vm0, %v1001_v19  }
 0x124   :  { %1872 = vst.msk [vmem:[%s4366_s1 + $0x151] sm:$0x4] %vm7_vm0, %v1001_v19   ;;  %1873 = vst.msk [vmem:[%s4366_s1 + $0x1d0] sm:$0x8] %vm7_vm0, %v1001_v19   ;;  %v1025_v21 = vpop.permute.xlu0 %1024  }
 0x125   :  { %1874 = vst.msk [vmem:[%s4366_s1 + $0x54] sm:$0x1] %vm7_vm0, %v1013_v20   ;;  %1875 = vst.msk [vmem:[%s4366_s1 + $0xd3] sm:$0x2] %vm7_vm0, %v1013_v20   ;;  %v1037_v22 = vpop.permute.xlu1 %1036  }
 0x126   :  { %1876 = vst.msk [vmem:[%s4366_s1 + $0x152] sm:$0x4] %vm7_vm0, %v1013_v20   ;;  %1877 = vst.msk [vmem:[%s4366_s1 + $0x1d1] sm:$0x8] %vm7_vm0, %v1013_v20  }
 0x127   :  { %1878 = vst.msk [vmem:[%s4366_s1 + $0x55] sm:$0x1] %vm7_vm0, %v1025_v21   ;;  %1879 = vst.msk [vmem:[%s4366_s1 + $0xd4] sm:$0x2] %vm7_vm0, %v1025_v21  }
 0x128   :  { %1880 = vst.msk [vmem:[%s4366_s1 + $0x153] sm:$0x4] %vm7_vm0, %v1025_v21   ;;  %1881 = vst.msk [vmem:[%s4366_s1 + $0x1d2] sm:$0x8] %vm7_vm0, %v1025_v21   ;;  %v1049_v23 = vpop.permute.xlu0 %1048  }
 0x129   :  { %1882 = vst.msk [vmem:[%s4366_s1 + $0x56] sm:$0x1] %vm7_vm0, %v1037_v22   ;;  %1883 = vst.msk [vmem:[%s4366_s1 + $0xd5] sm:$0x2] %vm7_vm0, %v1037_v22   ;;  %v1061_v24 = vpop.permute.xlu1 %1060  }
 0x12a   :  { %1884 = vst.msk [vmem:[%s4366_s1 + $0x154] sm:$0x4] %vm7_vm0, %v1037_v22   ;;  %1885 = vst.msk [vmem:[%s4366_s1 + $0x1d3] sm:$0x8] %vm7_vm0, %v1037_v22  }
 0x12b   :  { %1886 = vst.msk [vmem:[%s4366_s1 + $0x57] sm:$0x1] %vm7_vm0, %v1049_v23   ;;  %1887 = vst.msk [vmem:[%s4366_s1 + $0xd6] sm:$0x2] %vm7_vm0, %v1049_v23  }
 0x12c   :  { %1888 = vst.msk [vmem:[%s4366_s1 + $0x155] sm:$0x4] %vm7_vm0, %v1049_v23   ;;  %1889 = vst.msk [vmem:[%s4366_s1 + $0x1d4] sm:$0x8] %vm7_vm0, %v1049_v23   ;;  %v1073_v25 = vpop.permute.xlu0 %1072  }
 0x12d   :  { %1890 = vst.msk [vmem:[%s4366_s1 + $0x58] sm:$0x1] %vm7_vm0, %v1061_v24   ;;  %1891 = vst.msk [vmem:[%s4366_s1 + $0xd7] sm:$0x2] %vm7_vm0, %v1061_v24   ;;  %v1085_v26 = vpop.permute.xlu1 %1084  }
 0x12e   :  { %1892 = vst.msk [vmem:[%s4366_s1 + $0x156] sm:$0x4] %vm7_vm0, %v1061_v24   ;;  %1893 = vst.msk [vmem:[%s4366_s1 + $0x1d5] sm:$0x8] %vm7_vm0, %v1061_v24  }
 0x12f   :  { %1894 = vst.msk [vmem:[%s4366_s1 + $0x59] sm:$0x1] %vm7_vm0, %v1073_v25   ;;  %1895 = vst.msk [vmem:[%s4366_s1 + $0xd8] sm:$0x2] %vm7_vm0, %v1073_v25  }
 0x130   :  { %1896 = vst.msk [vmem:[%s4366_s1 + $0x157] sm:$0x4] %vm7_vm0, %v1073_v25   ;;  %1897 = vst.msk [vmem:[%s4366_s1 + $0x1d6] sm:$0x8] %vm7_vm0, %v1073_v25   ;;  %v1097_v27 = vpop.permute.xlu0 %1096  }
 0x131   :  { %1898 = vst.msk [vmem:[%s4366_s1 + $0x5a] sm:$0x1] %vm7_vm0, %v1085_v26   ;;  %1899 = vst.msk [vmem:[%s4366_s1 + $0xd9] sm:$0x2] %vm7_vm0, %v1085_v26   ;;  %v1109_v28 = vpop.permute.xlu1 %1108  }
 0x132   :  { %1900 = vst.msk [vmem:[%s4366_s1 + $0x158] sm:$0x4] %vm7_vm0, %v1085_v26   ;;  %1901 = vst.msk [vmem:[%s4366_s1 + $0x1d7] sm:$0x8] %vm7_vm0, %v1085_v26  }
 0x133   :  { %1902 = vst.msk [vmem:[%s4366_s1 + $0x5b] sm:$0x1] %vm7_vm0, %v1097_v27   ;;  %1903 = vst.msk [vmem:[%s4366_s1 + $0xda] sm:$0x2] %vm7_vm0, %v1097_v27  }
 0x134   :  { %1904 = vst.msk [vmem:[%s4366_s1 + $0x159] sm:$0x4] %vm7_vm0, %v1097_v27   ;;  %1905 = vst.msk [vmem:[%s4366_s1 + $0x1d8] sm:$0x8] %vm7_vm0, %v1097_v27   ;;  %v1121_v29 = vpop.permute.xlu0 %1120  }
 0x135   :  { %1906 = vst.msk [vmem:[%s4366_s1 + $0x5c] sm:$0x1] %vm7_vm0, %v1109_v28   ;;  %1907 = vst.msk [vmem:[%s4366_s1 + $0xdb] sm:$0x2] %vm7_vm0, %v1109_v28   ;;  %v1133_v30 = vpop.permute.xlu1 %1132  }
 0x136   :  { %1908 = vst.msk [vmem:[%s4366_s1 + $0x15a] sm:$0x4] %vm7_vm0, %v1109_v28   ;;  %1909 = vst.msk [vmem:[%s4366_s1 + $0x1d9] sm:$0x8] %vm7_vm0, %v1109_v28  }
 0x137   :  { %1910 = vst.msk [vmem:[%s4366_s1 + $0x5d] sm:$0x1] %vm7_vm0, %v1121_v29   ;;  %1911 = vst.msk [vmem:[%s4366_s1 + $0xdc] sm:$0x2] %vm7_vm0, %v1121_v29  }
 0x138   :  { %1912 = vst.msk [vmem:[%s4366_s1 + $0x15b] sm:$0x4] %vm7_vm0, %v1121_v29   ;;  %1913 = vst.msk [vmem:[%s4366_s1 + $0x1da] sm:$0x8] %vm7_vm0, %v1121_v29   ;;  %v1145_v31 = vpop.permute.xlu0 %1144  }
 0x139   :  { %1914 = vst.msk [vmem:[%s4366_s1 + $0x5e] sm:$0x1] %vm7_vm0, %v1133_v30   ;;  %1915 = vst.msk [vmem:[%s4366_s1 + $0xdd] sm:$0x2] %vm7_vm0, %v1133_v30   ;;  %v1157_v32 = vpop.permute.xlu1 %1156  }
 0x13a   :  { %1916 = vst.msk [vmem:[%s4366_s1 + $0x15c] sm:$0x4] %vm7_vm0, %v1133_v30   ;;  %1917 = vst.msk [vmem:[%s4366_s1 + $0x1db] sm:$0x8] %vm7_vm0, %v1133_v30  }
 0x13b   :  { %1918 = vst.msk [vmem:[%s4366_s1 + $0x5f] sm:$0x1] %vm7_vm0, %v1145_v31   ;;  %1919 = vst.msk [vmem:[%s4366_s1 + $0xde] sm:$0x2] %vm7_vm0, %v1145_v31  }
 0x13c   :  { %1920 = vst.msk [vmem:[%s4366_s1 + $0x15d] sm:$0x4] %vm7_vm0, %v1145_v31   ;;  %1921 = vst.msk [vmem:[%s4366_s1 + $0x1dc] sm:$0x8] %vm7_vm0, %v1145_v31   ;;  %v1169_v33 = vpop.permute.xlu0 %1168  }
 0x13d   :  { %1922 = vst.msk [vmem:[%s4366_s1 + $0x60] sm:$0x1] %vm7_vm0, %v1157_v32   ;;  %1923 = vst.msk [vmem:[%s4366_s1 + $0xdf] sm:$0x2] %vm7_vm0, %v1157_v32   ;;  %v1181_v34 = vpop.permute.xlu1 %1180  }
 0x13e   :  { %1924 = vst.msk [vmem:[%s4366_s1 + $0x15e] sm:$0x4] %vm7_vm0, %v1157_v32   ;;  %1925 = vst.msk [vmem:[%s4366_s1 + $0x1dd] sm:$0x8] %vm7_vm0, %v1157_v32  }
 0x13f   :  { %1926 = vst.msk [vmem:[%s4366_s1 + $0x61] sm:$0x1] %vm7_vm0, %v1169_v33   ;;  %1927 = vst.msk [vmem:[%s4366_s1 + $0xe0] sm:$0x2] %vm7_vm0, %v1169_v33  }
 0x140   :  { %1928 = vst.msk [vmem:[%s4366_s1 + $0x15f] sm:$0x4] %vm7_vm0, %v1169_v33   ;;  %1929 = vst.msk [vmem:[%s4366_s1 + $0x1de] sm:$0x8] %vm7_vm0, %v1169_v33   ;;  %v1193_v35 = vpop.permute.xlu0 %1192  }
 0x141   :  { %1930 = vst.msk [vmem:[%s4366_s1 + $0x62] sm:$0x1] %vm7_vm0, %v1181_v34   ;;  %1931 = vst.msk [vmem:[%s4366_s1 + $0xe1] sm:$0x2] %vm7_vm0, %v1181_v34   ;;  %v1205_v36 = vpop.permute.xlu1 %1204  }
 0x142   :  { %1932 = vst.msk [vmem:[%s4366_s1 + $0x160] sm:$0x4] %vm7_vm0, %v1181_v34   ;;  %1933 = vst.msk [vmem:[%s4366_s1 + $0x1df] sm:$0x8] %vm7_vm0, %v1181_v34  }
 0x143   :  { %1934 = vst.msk [vmem:[%s4366_s1 + $0x63] sm:$0x1] %vm7_vm0, %v1193_v35   ;;  %1935 = vst.msk [vmem:[%s4366_s1 + $0xe2] sm:$0x2] %vm7_vm0, %v1193_v35  }
 0x144   :  { %1936 = vst.msk [vmem:[%s4366_s1 + $0x161] sm:$0x4] %vm7_vm0, %v1193_v35   ;;  %1937 = vst.msk [vmem:[%s4366_s1 + $0x1e0] sm:$0x8] %vm7_vm0, %v1193_v35   ;;  %v1217_v37 = vpop.permute.xlu0 %1216  }
 0x145   :  { %1938 = vst.msk [vmem:[%s4366_s1 + $0x64] sm:$0x1] %vm7_vm0, %v1205_v36   ;;  %1939 = vst.msk [vmem:[%s4366_s1 + $0xe3] sm:$0x2] %vm7_vm0, %v1205_v36   ;;  %v1229_v38 = vpop.permute.xlu1 %1228  }
 0x146   :  { %1940 = vst.msk [vmem:[%s4366_s1 + $0x162] sm:$0x4] %vm7_vm0, %v1205_v36   ;;  %1941 = vst.msk [vmem:[%s4366_s1 + $0x1e1] sm:$0x8] %vm7_vm0, %v1205_v36  }
 0x147   :  { %1942 = vst.msk [vmem:[%s4366_s1 + $0x65] sm:$0x1] %vm7_vm0, %v1217_v37   ;;  %1943 = vst.msk [vmem:[%s4366_s1 + $0xe4] sm:$0x2] %vm7_vm0, %v1217_v37  }
 0x148   :  { %1944 = vst.msk [vmem:[%s4366_s1 + $0x163] sm:$0x4] %vm7_vm0, %v1217_v37   ;;  %1945 = vst.msk [vmem:[%s4366_s1 + $0x1e2] sm:$0x8] %vm7_vm0, %v1217_v37   ;;  %v1241_v39 = vpop.permute.xlu0 %1240  }
 0x149   :  { %1946 = vst.msk [vmem:[%s4366_s1 + $0x66] sm:$0x1] %vm7_vm0, %v1229_v38   ;;  %1947 = vst.msk [vmem:[%s4366_s1 + $0xe5] sm:$0x2] %vm7_vm0, %v1229_v38   ;;  %v1253_v40 = vpop.permute.xlu1 %1252  }
 0x14a   :  { %1948 = vst.msk [vmem:[%s4366_s1 + $0x164] sm:$0x4] %vm7_vm0, %v1229_v38   ;;  %1949 = vst.msk [vmem:[%s4366_s1 + $0x1e3] sm:$0x8] %vm7_vm0, %v1229_v38  }
 0x14b   :  { %1950 = vst.msk [vmem:[%s4366_s1 + $0x67] sm:$0x1] %vm7_vm0, %v1241_v39   ;;  %1951 = vst.msk [vmem:[%s4366_s1 + $0xe6] sm:$0x2] %vm7_vm0, %v1241_v39  }
 0x14c   :  { %1952 = vst.msk [vmem:[%s4366_s1 + $0x165] sm:$0x4] %vm7_vm0, %v1241_v39   ;;  %1953 = vst.msk [vmem:[%s4366_s1 + $0x1e4] sm:$0x8] %vm7_vm0, %v1241_v39   ;;  %v1265_v41 = vpop.permute.xlu0 %1264  }
 0x14d   :  { %1954 = vst.msk [vmem:[%s4366_s1 + $0x68] sm:$0x1] %vm7_vm0, %v1253_v40   ;;  %1955 = vst.msk [vmem:[%s4366_s1 + $0xe7] sm:$0x2] %vm7_vm0, %v1253_v40   ;;  %v1277_v42 = vpop.permute.xlu1 %1276  }
 0x14e   :  { %1956 = vst.msk [vmem:[%s4366_s1 + $0x166] sm:$0x4] %vm7_vm0, %v1253_v40   ;;  %1957 = vst.msk [vmem:[%s4366_s1 + $0x1e5] sm:$0x8] %vm7_vm0, %v1253_v40  }
 0x14f   :  { %1958 = vst.msk [vmem:[%s4366_s1 + $0x69] sm:$0x1] %vm7_vm0, %v1265_v41   ;;  %1959 = vst.msk [vmem:[%s4366_s1 + $0xe8] sm:$0x2] %vm7_vm0, %v1265_v41  }
 0x150   :  { %1960 = vst.msk [vmem:[%s4366_s1 + $0x167] sm:$0x4] %vm7_vm0, %v1265_v41   ;;  %1961 = vst.msk [vmem:[%s4366_s1 + $0x1e6] sm:$0x8] %vm7_vm0, %v1265_v41   ;;  %v1289_v43 = vpop.permute.xlu0 %1288  }
 0x151   :  { %1962 = vst.msk [vmem:[%s4366_s1 + $0x6a] sm:$0x1] %vm7_vm0, %v1277_v42   ;;  %1963 = vst.msk [vmem:[%s4366_s1 + $0xe9] sm:$0x2] %vm7_vm0, %v1277_v42   ;;  %v1301_v44 = vpop.permute.xlu1 %1300  }
 0x152   :  { %1964 = vst.msk [vmem:[%s4366_s1 + $0x168] sm:$0x4] %vm7_vm0, %v1277_v42   ;;  %1965 = vst.msk [vmem:[%s4366_s1 + $0x1e7] sm:$0x8] %vm7_vm0, %v1277_v42  }
 0x153   :  { %1966 = vst.msk [vmem:[%s4366_s1 + $0x6b] sm:$0x1] %vm7_vm0, %v1289_v43   ;;  %1967 = vst.msk [vmem:[%s4366_s1 + $0xea] sm:$0x2] %vm7_vm0, %v1289_v43  }
 0x154   :  { %1968 = vst.msk [vmem:[%s4366_s1 + $0x169] sm:$0x4] %vm7_vm0, %v1289_v43   ;;  %1969 = vst.msk [vmem:[%s4366_s1 + $0x1e8] sm:$0x8] %vm7_vm0, %v1289_v43   ;;  %v1313_v45 = vpop.permute.xlu0 %1312  }
 0x155   :  { %1970 = vst.msk [vmem:[%s4366_s1 + $0x6c] sm:$0x1] %vm7_vm0, %v1301_v44   ;;  %1971 = vst.msk [vmem:[%s4366_s1 + $0xeb] sm:$0x2] %vm7_vm0, %v1301_v44   ;;  %v1325_v46 = vpop.permute.xlu1 %1324  }
 0x156   :  { %1972 = vst.msk [vmem:[%s4366_s1 + $0x16a] sm:$0x4] %vm7_vm0, %v1301_v44   ;;  %1973 = vst.msk [vmem:[%s4366_s1 + $0x1e9] sm:$0x8] %vm7_vm0, %v1301_v44  }
 0x157   :  { %1974 = vst.msk [vmem:[%s4366_s1 + $0x6d] sm:$0x1] %vm7_vm0, %v1313_v45   ;;  %1975 = vst.msk [vmem:[%s4366_s1 + $0xec] sm:$0x2] %vm7_vm0, %v1313_v45  }
 0x158   :  { %1976 = vst.msk [vmem:[%s4366_s1 + $0x16b] sm:$0x4] %vm7_vm0, %v1313_v45   ;;  %1977 = vst.msk [vmem:[%s4366_s1 + $0x1ea] sm:$0x8] %vm7_vm0, %v1313_v45   ;;  %v1337_v47 = vpop.permute.xlu0 %1336  }
 0x159   :  { %1978 = vst.msk [vmem:[%s4366_s1 + $0x6e] sm:$0x1] %vm7_vm0, %v1325_v46   ;;  %1979 = vst.msk [vmem:[%s4366_s1 + $0xed] sm:$0x2] %vm7_vm0, %v1325_v46   ;;  %v1349_v48 = vpop.permute.xlu1 %1348  }
 0x15a   :  { %1980 = vst.msk [vmem:[%s4366_s1 + $0x16c] sm:$0x4] %vm7_vm0, %v1325_v46   ;;  %1981 = vst.msk [vmem:[%s4366_s1 + $0x1eb] sm:$0x8] %vm7_vm0, %v1325_v46  }
 0x15b   :  { %1982 = vst.msk [vmem:[%s4366_s1 + $0x6f] sm:$0x1] %vm7_vm0, %v1337_v47   ;;  %1983 = vst.msk [vmem:[%s4366_s1 + $0xee] sm:$0x2] %vm7_vm0, %v1337_v47  }
 0x15c   :  { %1984 = vst.msk [vmem:[%s4366_s1 + $0x16d] sm:$0x4] %vm7_vm0, %v1337_v47   ;;  %1985 = vst.msk [vmem:[%s4366_s1 + $0x1ec] sm:$0x8] %vm7_vm0, %v1337_v47   ;;  %v1361_v49 = vpop.permute.xlu0 %1360  }
 0x15d   :  { %1986 = vst.msk [vmem:[%s4366_s1 + $0x70] sm:$0x1] %vm7_vm0, %v1349_v48   ;;  %1987 = vst.msk [vmem:[%s4366_s1 + $0xef] sm:$0x2] %vm7_vm0, %v1349_v48   ;;  %v1373_v50 = vpop.permute.xlu1 %1372  }
 0x15e   :  { %1988 = vst.msk [vmem:[%s4366_s1 + $0x16e] sm:$0x4] %vm7_vm0, %v1349_v48   ;;  %1989 = vst.msk [vmem:[%s4366_s1 + $0x1ed] sm:$0x8] %vm7_vm0, %v1349_v48  }
 0x15f   :  { %1990 = vst.msk [vmem:[%s4366_s1 + $0x71] sm:$0x1] %vm7_vm0, %v1361_v49   ;;  %1991 = vst.msk [vmem:[%s4366_s1 + $0xf0] sm:$0x2] %vm7_vm0, %v1361_v49  }
 0x160   :  { %1992 = vst.msk [vmem:[%s4366_s1 + $0x16f] sm:$0x4] %vm7_vm0, %v1361_v49   ;;  %1993 = vst.msk [vmem:[%s4366_s1 + $0x1ee] sm:$0x8] %vm7_vm0, %v1361_v49   ;;  %v1385_v51 = vpop.permute.xlu0 %1384  }
 0x161   :  { %1994 = vst.msk [vmem:[%s4366_s1 + $0x72] sm:$0x1] %vm7_vm0, %v1373_v50   ;;  %1995 = vst.msk [vmem:[%s4366_s1 + $0xf1] sm:$0x2] %vm7_vm0, %v1373_v50   ;;  %v1397_v52 = vpop.permute.xlu1 %1396  }
 0x162   :  { %1996 = vst.msk [vmem:[%s4366_s1 + $0x170] sm:$0x4] %vm7_vm0, %v1373_v50   ;;  %1997 = vst.msk [vmem:[%s4366_s1 + $0x1ef] sm:$0x8] %vm7_vm0, %v1373_v50  }
 0x163   :  { %1998 = vst.msk [vmem:[%s4366_s1 + $0x73] sm:$0x1] %vm7_vm0, %v1385_v51   ;;  %1999 = vst.msk [vmem:[%s4366_s1 + $0xf2] sm:$0x2] %vm7_vm0, %v1385_v51  }
 0x164   :  { %2000 = vst.msk [vmem:[%s4366_s1 + $0x171] sm:$0x4] %vm7_vm0, %v1385_v51   ;;  %2001 = vst.msk [vmem:[%s4366_s1 + $0x1f0] sm:$0x8] %vm7_vm0, %v1385_v51   ;;  %v1409_v53 = vpop.permute.xlu0 %1408  }
 0x165   :  { %2002 = vst.msk [vmem:[%s4366_s1 + $0x74] sm:$0x1] %vm7_vm0, %v1397_v52   ;;  %2003 = vst.msk [vmem:[%s4366_s1 + $0xf3] sm:$0x2] %vm7_vm0, %v1397_v52   ;;  %v1421_v54 = vpop.permute.xlu1 %1420  }
 0x166   :  { %2004 = vst.msk [vmem:[%s4366_s1 + $0x172] sm:$0x4] %vm7_vm0, %v1397_v52   ;;  %2005 = vst.msk [vmem:[%s4366_s1 + $0x1f1] sm:$0x8] %vm7_vm0, %v1397_v52  }
 0x167   :  { %2006 = vst.msk [vmem:[%s4366_s1 + $0x75] sm:$0x1] %vm7_vm0, %v1409_v53   ;;  %2007 = vst.msk [vmem:[%s4366_s1 + $0xf4] sm:$0x2] %vm7_vm0, %v1409_v53  }
 0x168   :  { %2008 = vst.msk [vmem:[%s4366_s1 + $0x173] sm:$0x4] %vm7_vm0, %v1409_v53   ;;  %2009 = vst.msk [vmem:[%s4366_s1 + $0x1f2] sm:$0x8] %vm7_vm0, %v1409_v53   ;;  %v1433_v55 = vpop.permute.xlu0 %1432  }
 0x169   :  { %2010 = vst.msk [vmem:[%s4366_s1 + $0x76] sm:$0x1] %vm7_vm0, %v1421_v54   ;;  %2011 = vst.msk [vmem:[%s4366_s1 + $0xf5] sm:$0x2] %vm7_vm0, %v1421_v54   ;;  %v1445_v56 = vpop.permute.xlu1 %1444  }
 0x16a   :  { %2012 = vst.msk [vmem:[%s4366_s1 + $0x174] sm:$0x4] %vm7_vm0, %v1421_v54   ;;  %2013 = vst.msk [vmem:[%s4366_s1 + $0x1f3] sm:$0x8] %vm7_vm0, %v1421_v54  }
 0x16b   :  { %2014 = vst.msk [vmem:[%s4366_s1 + $0x77] sm:$0x1] %vm7_vm0, %v1433_v55   ;;  %2015 = vst.msk [vmem:[%s4366_s1 + $0xf6] sm:$0x2] %vm7_vm0, %v1433_v55  }
 0x16c   :  { %2016 = vst.msk [vmem:[%s4366_s1 + $0x175] sm:$0x4] %vm7_vm0, %v1433_v55   ;;  %2017 = vst.msk [vmem:[%s4366_s1 + $0x1f4] sm:$0x8] %vm7_vm0, %v1433_v55   ;;  %v1457_v57 = vpop.permute.xlu0 %1456  }
 0x16d   :  { %2018 = vst.msk [vmem:[%s4366_s1 + $0x78] sm:$0x1] %vm7_vm0, %v1445_v56   ;;  %2019 = vst.msk [vmem:[%s4366_s1 + $0xf7] sm:$0x2] %vm7_vm0, %v1445_v56   ;;  %v1469_v58 = vpop.permute.xlu1 %1468  }
 0x16e   :  { %2020 = vst.msk [vmem:[%s4366_s1 + $0x176] sm:$0x4] %vm7_vm0, %v1445_v56   ;;  %2021 = vst.msk [vmem:[%s4366_s1 + $0x1f5] sm:$0x8] %vm7_vm0, %v1445_v56  }
 0x16f   :  { %2022 = vst.msk [vmem:[%s4366_s1 + $0x79] sm:$0x1] %vm7_vm0, %v1457_v57   ;;  %2023 = vst.msk [vmem:[%s4366_s1 + $0xf8] sm:$0x2] %vm7_vm0, %v1457_v57  }
 0x170   :  { %2024 = vst.msk [vmem:[%s4366_s1 + $0x177] sm:$0x4] %vm7_vm0, %v1457_v57   ;;  %2025 = vst.msk [vmem:[%s4366_s1 + $0x1f6] sm:$0x8] %vm7_vm0, %v1457_v57   ;;  %v1481_v59 = vpop.permute.xlu0 %1480  }
 0x171   :  { %2026 = vst.msk [vmem:[%s4366_s1 + $0x7a] sm:$0x1] %vm7_vm0, %v1469_v58   ;;  %2027 = vst.msk [vmem:[%s4366_s1 + $0xf9] sm:$0x2] %vm7_vm0, %v1469_v58   ;;  %v1493_v60 = vpop.permute.xlu1 %1492  }
 0x172   :  { %2028 = vst.msk [vmem:[%s4366_s1 + $0x178] sm:$0x4] %vm7_vm0, %v1469_v58   ;;  %2029 = vst.msk [vmem:[%s4366_s1 + $0x1f7] sm:$0x8] %vm7_vm0, %v1469_v58  }
 0x173   :  { %2030 = vst.msk [vmem:[%s4366_s1 + $0x7b] sm:$0x1] %vm7_vm0, %v1481_v59   ;;  %2031 = vst.msk [vmem:[%s4366_s1 + $0xfa] sm:$0x2] %vm7_vm0, %v1481_v59  }
 0x174   :  { %2032 = vst.msk [vmem:[%s4366_s1 + $0x179] sm:$0x4] %vm7_vm0, %v1481_v59   ;;  %2033 = vst.msk [vmem:[%s4366_s1 + $0x1f8] sm:$0x8] %vm7_vm0, %v1481_v59   ;;  %v1505_v61 = vpop.permute.xlu0 %1504  }
 0x175   :  { %2034 = vst.msk [vmem:[%s4366_s1 + $0x7c] sm:$0x1] %vm7_vm0, %v1493_v60   ;;  %2035 = vst.msk [vmem:[%s4366_s1 + $0xfb] sm:$0x2] %vm7_vm0, %v1493_v60   ;;  %v1517_v62 = vpop.permute.xlu1 %1516  }
 0x176   :  { %2036 = vst.msk [vmem:[%s4366_s1 + $0x17a] sm:$0x4] %vm7_vm0, %v1493_v60   ;;  %2037 = vst.msk [vmem:[%s4366_s1 + $0x1f9] sm:$0x8] %vm7_vm0, %v1493_v60  }
 0x177   :  { %2038 = vst.msk [vmem:[%s4366_s1 + $0x7d] sm:$0x1] %vm7_vm0, %v1505_v61   ;;  %2039 = vst.msk [vmem:[%s4366_s1 + $0xfc] sm:$0x2] %vm7_vm0, %v1505_v61  }
 0x178   :  { %2040 = vst.msk [vmem:[%s4366_s1 + $0x17b] sm:$0x4] %vm7_vm0, %v1505_v61   ;;  %2041 = vst.msk [vmem:[%s4366_s1 + $0x1fa] sm:$0x8] %vm7_vm0, %v1505_v61   ;;  %v1529_v63 = vpop.permute.xlu0 %1528  }
 0x179   :  { %2042 = vst.msk [vmem:[%s4366_s1 + $0x7e] sm:$0x1] %vm7_vm0, %v1517_v62   ;;  %2043 = vst.msk [vmem:[%s4366_s1 + $0xfd] sm:$0x2] %vm7_vm0, %v1517_v62  }
 0x17a   :  { %2044 = vst.msk [vmem:[%s4366_s1 + $0x17c] sm:$0x4] %vm7_vm0, %v1517_v62   ;;  %2045 = vst.msk [vmem:[%s4366_s1 + $0x1fb] sm:$0x8] %vm7_vm0, %v1517_v62  }
 0x17b   :  { %2046 = vst.msk [vmem:[%s4366_s1 + $0x7f] sm:$0x1] %vm7_vm0, %v1529_v63   ;;  %2047 = vst.msk [vmem:[%s4366_s1 + $0xfe] sm:$0x2] %vm7_vm0, %v1529_v63  }
 0x17c   :  { %2048 = vst.msk [vmem:[%s4366_s1 + $0x17d] sm:$0x4] %vm7_vm0, %v1529_v63   ;;  %2049 = vst.msk [vmem:[%s4366_s1 + $0x1fc] sm:$0x8] %vm7_vm0, %v1529_v63  }

</bundles_post_ra>
